<compile_context>
chip_gen: v7x
topology: tpu7x:2x2x1
jax: 0.10.0
libtpu: 0.0.40
codegen_flags: <defaults>
</compile_context>

<pallas_src>
import functools
import math

import jax
import jax.numpy as jnp
from jax import lax
from jax.experimental import pallas as pl
from jax.experimental.pallas import tpu as pltpu


# ---------------------------------------------------------------------------
# Fused decoder kernel: one invocation == one (batch element, layer) step.
# The activation is carried across layers in `x_scr` (VMEM scratch).
# ---------------------------------------------------------------------------

def _fused_decoder_kernel(
        # inputs (order matches in_specs in `fused_decoder`)
        alpha_ref, x_ref, enc_ref, ing_ref, inb_ref,
        wqkv_s_ref, fc_s_ref, g_s_ref, b_s_ref,
        wq_e_ref, wkv_e_ref, fc_e_ref, g_e_ref, b_e_ref,
        w1_ref, b1_ref, w2_ref, b2_ref, g_f_ref, b_f_ref,
        # output
        o_ref,
        # scratch
        x_scr,
        *, n_head, d_k, d_v, kernel_size, eps):
    L = x_scr.shape[0]
    hdk = n_head * d_k
    hdv = n_head * d_v
    pad = 1 if kernel_size == 3 else (kernel_size - 1) // 2

    layer = pl.program_id(1)
    n_layers = pl.num_programs(1)

    def layer_norm(y, g, b):
        mu = jnp.mean(y, axis=-1, keepdims=True)
        var = jnp.mean(jnp.square(y - mu), axis=-1, keepdims=True)
        return (y - mu) * lax.rsqrt(var + eps) * g + b

    # ---- Decoder embedding LayerNorm (applied once per batch element, at layer 0) ----
    @pl.when(layer == 0)
    def _():
        x_scr[...] = layer_norm(x_ref[0], ing_ref[...], inb_ref[...])

    x = x_scr[...]                                   # (L, D) f32, carried across layers

    # LaS relative-position modulation, generated on the fly (no LxL HBM operand):
    #   eld[i, j] = -alpha_c * (j - i) = alpha_c * (i - j)
    row = lax.broadcasted_iota(jnp.int32, (L, L), 0)
    col = lax.broadcasted_iota(jnp.int32, (L, L), 1)
    eld = alpha_ref[0] * (row - col).astype(jnp.float32)    # (1,1) * (L,L) broadcast

    def smooth(v):
        # avg_pool1d(kernel_size, stride=1, zero pad, count_include_pad=True) along the
        # sequence axis, applied to the values via XLU rolls (no LxL band matmul).
        rid = lax.broadcasted_iota(jnp.int32, v.shape, 0)
        acc = v
        for off in range(1, pad + 1):                # static unroll (pad is tiny)
            dn = pltpu.roll(v, off, axis=0)          # dn[i] = v[i - off]   (wrapped)
            acc = acc + jnp.where(rid >= off, dn, 0.0)
            up = pltpu.roll(v, L - off, axis=0)      # up[i] = v[i + off]   (wrapped)
            acc = acc + jnp.where(rid < L - off, up, 0.0)
        return acc * (1.0 / kernel_size)

    def attention_core(q, k, v, fc_w, residual, g, b):
        v_s = smooth(v).astype(jnp.bfloat16)         # (L, H*d_v), smoothed once, all heads
        qb = q.astype(jnp.bfloat16)
        kb = k.astype(jnp.bfloat16)
        head_outs = []
        for h in range(n_head):                      # static unroll; n_head is small
            qh = qb[:, h * d_k:(h + 1) * d_k]
            kh = kb[:, h * d_k:(h + 1) * d_k]
            s = lax.dot_general(qh, kh, (((1,), (1,)), ((), ())),
                                preferred_element_type=jnp.float32)   # (L, L) scores
            e = eld * s                              # multiplicative LaS modulation
            p = jnp.exp(e - jnp.max(e, axis=-1, keepdims=True))
            p = p * pl.reciprocal(jnp.sum(p, axis=-1, keepdims=True), approx=True)
            head_outs.append(
                jnp.dot(p.astype(jnp.bfloat16), v_s[:, h * d_v:(h + 1) * d_v],
                        preferred_element_type=jnp.float32))
        o_cat = jnp.concatenate(head_outs, axis=-1)  # (L, H*d_v)
        proj = jnp.dot(o_cat.astype(jnp.bfloat16), fc_w,
                       preferred_element_type=jnp.float32)   # single output projection
        return layer_norm(residual + proj, g, b)     # dropout: identity (eval)

    # ---- self attention (fused QKV projection; 1/sqrt(d_k) folded into Q weights) ----
    xb = x.astype(jnp.bfloat16)
    qkv = jnp.dot(xb, wqkv_s_ref[0], preferred_element_type=jnp.float32)
    q = qkv[:, :hdk]
    k = qkv[:, hdk:2 * hdk]
    v = qkv[:, 2 * hdk:2 * hdk + hdv]
    x = attention_core(q, k, v, fc_s_ref[0], x, g_s_ref[0], b_s_ref[0])

    # ---- encoder-decoder (cross) attention ----
    enc = enc_ref[0]                                 # (L, D) bf16 (cast in wrapper)
    q = jnp.dot(x.astype(jnp.bfloat16), wq_e_ref[0], preferred_element_type=jnp.float32)
    kv = jnp.dot(enc, wkv_e_ref[0], preferred_element_type=jnp.float32)
    k = kv[:, :hdk]
    v = kv[:, hdk:hdk + hdv]
    x = attention_core(q, k, v, fc_e_ref[0], x, g_e_ref[0], b_e_ref[0])

    # ---- position-wise FFN (+ residual + LayerNorm) ----
    h1 = jnp.dot(x.astype(jnp.bfloat16), w1_ref[0],
                 preferred_element_type=jnp.float32) + b1_ref[0]
    h1 = jnp.maximum(h1, 0.0)
    y = jnp.dot(h1.astype(jnp.bfloat16), w2_ref[0],
                preferred_element_type=jnp.float32) + b2_ref[0]
    x = layer_norm(y + x, g_f_ref[0], b_f_ref[0])    # dropout: identity (eval)

    x_scr[...] = x                                   # carry to the next layer

    @pl.when(layer == n_layers - 1)
    def _():
        o_ref[0] = x                                 # write back once per batch element


# ---------------------------------------------------------------------------
# Wrapper: single pallas_call for the whole layer stack.
# ---------------------------------------------------------------------------

def fused_decoder(x_emb, enc_bf16, p, *, n_head, d_k, d_v, kernel_size):
    B, L, D = x_emb.shape
    n_layers = p["alphas"].shape[0]
    assert enc_bf16.shape == (B, L, D), "LaS eld modulation requires len_q == len_k"
    assert kernel_size % 2 == 1, "avg_pool1d smoothing implemented for odd kernel_size"

    def per_batch(shape):    # blocks indexed by batch, resident across the layer axis
        return pl.BlockSpec((1,) + tuple(shape[1:]), lambda b, l: (b, 0, 0))

    def per_layer(arr):      # stacked per-layer params, streamed along the layer axis
        return pl.BlockSpec((1,) + tuple(arr.shape[1:]), lambda b, l: (l, 0, 0))

    def const2d(arr):        # small 2-D constants, resident for the whole grid
        return pl.BlockSpec(arr.shape, lambda b, l: (0, 0))

    inputs = (p["alphas"], x_emb, enc_bf16, p["ln_g"], p["ln_b"],
              p["slf_wqkv"], p["slf_fc"], p["slf_g"], p["slf_b"],
              p["enc_wq"], p["enc_wkv"], p["enc_fc"], p["enc_g"], p["enc_b"],
              p["w1"], p["b1"], p["w2"], p["b2"], p["ffn_g"], p["ffn_b"])

    in_specs = ([per_layer(p["alphas"]),
                 per_batch(x_emb.shape), per_batch(enc_bf16.shape),
                 const2d(p["ln_g"]), const2d(p["ln_b"])]
                + [per_layer(a) for a in inputs[5:]])

    kern = functools.partial(_fused_decoder_kernel, n_head=n_head, d_k=d_k, d_v=d_v,
                             kernel_size=kernel_size, eps=1e-6)

    return pl.pallas_call(
        kern,
        out_shape=jax.ShapeDtypeStruct((B, L, D), jnp.float32),
        grid=(B, n_layers),
        in_specs=in_specs,
        out_specs=pl.BlockSpec((1, L, D), lambda b, l: (b, 0, 0)),
        scratch_shapes=[pltpu.VMEM((L, D), jnp.float32)],
        compiler_params=pltpu.CompilerParams(
            dimension_semantics=("parallel", "arbitrary"),
            vmem_limit_bytes=32 * 1024 * 1024),
    )(*inputs)


def decoder_forward(params, trg_seq, enc_output, *, n_head, d_k, d_v, kernel_size):
    x = params["emb"][trg_seq]                       # (B, L, d_model) embedding gather
    # scale_emb=False; dropout: identity (eval)
    out = fused_decoder(x, enc_output.astype(jnp.bfloat16), params,
                        n_head=n_head, d_k=d_k, d_v=d_v, kernel_size=kernel_size)
    # the PyTorch module carries a trailing singleton dim from q.unsqueeze(2)
    return out[:, :, None, :]                        # (B, L, 1, d_model)


# ---------------------------------------------------------------------------
# Parameters: synthetic init mirroring the module's __init__ shapes, plus one-time
# host-side prep that folds/stacks everything into the fused-kernel layout.
# ---------------------------------------------------------------------------

def init_params(key, *, n_trg_vocab, d_model, d_inner, n_layers, n_head,
                d_k, d_v, pad_idx, b):
    keys = jax.random.split(key, 1 + n_layers)
    emb = 0.1 * jax.random.normal(keys[0], (n_trg_vocab, d_model), jnp.float32)
    emb = emb.at[pad_idx].set(0.0)                   # padding_idx row zeroed
    params = {"emb": emb,
              "ln_g": jnp.ones((d_model,), jnp.float32),
              "ln_b": jnp.zeros((d_model,), jnp.float32),
              "layers": []}

    def mha_params(k):
        ks = jax.random.split(k, 4)
        return {"w_qs": 0.1 * jax.random.normal(ks[0], (d_model, n_head * d_k), jnp.float32),
                "w_ks": 0.1 * jax.random.normal(ks[1], (d_model, n_head * d_k), jnp.float32),
                "w_vs": 0.1 * jax.random.normal(ks[2], (d_model, n_head * d_v), jnp.float32),
                "fc":   0.1 * jax.random.normal(ks[3], (n_head * d_v, d_model), jnp.float32),
                "ln_g": jnp.ones((d_model,), jnp.float32),
                "ln_b": jnp.zeros((d_model,), jnp.float32)}

    for layer_idx in range(n_layers):
        lk = jax.random.split(keys[1 + layer_idx], 3)
        if layer_idx == 0:
            alpha_c = 0.0
        else:
            alpha_c = -1.0 * math.log(b / (n_head - 1) * layer_idx)
        ffk = jax.random.split(lk[2], 2)
        ffn = {"w_1": 0.1 * jax.random.normal(ffk[0], (d_model, d_inner), jnp.float32),
               "b_1": jnp.zeros((d_inner,), jnp.float32),
               "w_2": 0.1 * jax.random.normal(ffk[1], (d_inner, d_model), jnp.float32),
               "b_2": jnp.zeros((d_model,), jnp.float32),
               "ln_g": jnp.ones((d_model,), jnp.float32),
               "ln_b": jnp.zeros((d_model,), jnp.float32)}
        params["layers"].append({"alpha_c": alpha_c,
                                 "slf": mha_params(lk[0]),
                                 "enc": mha_params(lk[1]),
                                 "ffn": ffn})
    return params


def prepare_params(params, *, d_k):
    """One-time host-side folding/stacking into the fused-kernel layout (bf16 weights)."""
    q_scale = 1.0 / math.sqrt(d_k)
    bf16 = jnp.bfloat16
    n_layers = len(params["layers"])

    def row(v):
        return v.reshape(1, -1)

    def stack(fn):
        return jnp.stack([fn(lp) for lp in params["layers"]], axis=0)

    return {
        "emb": params["emb"],
        "ln_g": row(params["ln_g"]), "ln_b": row(params["ln_b"]),
        "alphas": jnp.asarray([lp["alpha_c"] for lp in params["layers"]],
                              dtype=jnp.float32).reshape(n_layers, 1, 1),
        # self-attention: fused QKV (attention scale folded into the Q block)
        "slf_wqkv": stack(lambda lp: jnp.concatenate(
            [lp["slf"]["w_qs"] * q_scale, lp["slf"]["w_ks"], lp["slf"]["w_vs"]],
            axis=1)).astype(bf16),
        "slf_fc": stack(lambda lp: lp["slf"]["fc"]).astype(bf16),
        "slf_g": stack(lambda lp: row(lp["slf"]["ln_g"])),
        "slf_b": stack(lambda lp: row(lp["slf"]["ln_b"])),
        # cross-attention: separate Q and KV weights (K/V project the encoder output)
        "enc_wq": stack(lambda lp: lp["enc"]["w_qs"] * q_scale).astype(bf16),
        "enc_wkv": stack(lambda lp: jnp.concatenate(
            [lp["enc"]["w_ks"], lp["enc"]["w_vs"]], axis=1)).astype(bf16),
        "enc_fc": stack(lambda lp: lp["enc"]["fc"]).astype(bf16),
        "enc_g": stack(lambda lp: row(lp["enc"]["ln_g"])),
        "enc_b": stack(lambda lp: row(lp["enc"]["ln_b"])),
        # position-wise FFN
        "w1": stack(lambda lp: lp["ffn"]["w_1"]).astype(bf16),
        "b1": stack(lambda lp: row(lp["ffn"]["b_1"])),
        "w2": stack(lambda lp: lp["ffn"]["w_2"]).astype(bf16),
        "b2": stack(lambda lp: row(lp["ffn"]["b_2"])),
        "ffn_g": stack(lambda lp: row(lp["ffn"]["ln_g"])),
        "ffn_b": stack(lambda lp: row(lp["ffn"]["ln_b"])),
    }


if __name__ == "__main__":
    # small shapes consistent with the module
    n_trg_vocab, d_model, d_inner = 50, 32, 64
    n_layers, n_head, d_k, d_v = 2, 4, 8, 8
    pad_idx, b, kernel_size = 0, 0.001, 3
    B, L = 2, 8

    key = jax.random.PRNGKey(0)
    k_param, k_seq, k_enc = jax.random.split(key, 3)

    raw = init_params(k_param, n_trg_vocab=n_trg_vocab, d_model=d_model,
                      d_inner=d_inner, n_layers=n_layers, n_head=n_head,
                      d_k=d_k, d_v=d_v, pad_idx=pad_idx, b=b)
    params = prepare_params(raw, d_k=d_k)

    trg_seq = jax.random.randint(k_seq, (B, L), 0, n_trg_vocab)
    enc_output = 0.1 * jax.random.normal(k_enc, (B, L, d_model), jnp.float32)

    fwd = jax.jit(functools.partial(decoder_forward, n_head=n_head, d_k=d_k,
                                    d_v=d_v, kernel_size=kernel_size))
    out = fwd(params, trg_seq, enc_output)
    jax.block_until_ready(out)
    assert out.shape == (B, L, 1, d_model)
    assert bool(jnp.all(jnp.isfinite(out)))
    print("KERNEL_OK")
</pallas_src>

<mosaic_0001>
module attributes {stable_mosaic.version = 11 : i64} {
  func.func @_fused_decoder_kernel(%arg0: i32, %arg1: i32, %arg2: memref<1x1x1xf32, #tpu.memory_space<vmem>>, %arg3: memref<1x8x32xf32, #tpu.memory_space<vmem>>, %arg4: memref<1x8x32xbf16, #tpu.memory_space<vmem>>, %arg5: memref<1x32xf32, #tpu.memory_space<vmem>>, %arg6: memref<1x32xf32, #tpu.memory_space<vmem>>, %arg7: memref<1x32x96xbf16, #tpu.memory_space<vmem>>, %arg8: memref<1x32x32xbf16, #tpu.memory_space<vmem>>, %arg9: memref<1x1x32xf32, #tpu.memory_space<vmem>>, %arg10: memref<1x1x32xf32, #tpu.memory_space<vmem>>, %arg11: memref<1x32x32xbf16, #tpu.memory_space<vmem>>, %arg12: memref<1x32x64xbf16, #tpu.memory_space<vmem>>, %arg13: memref<1x32x32xbf16, #tpu.memory_space<vmem>>, %arg14: memref<1x1x32xf32, #tpu.memory_space<vmem>>, %arg15: memref<1x1x32xf32, #tpu.memory_space<vmem>>, %arg16: memref<1x32x64xbf16, #tpu.memory_space<vmem>>, %arg17: memref<1x1x64xf32, #tpu.memory_space<vmem>>, %arg18: memref<1x64x32xbf16, #tpu.memory_space<vmem>>, %arg19: memref<1x1x32xf32, #tpu.memory_space<vmem>>, %arg20: memref<1x1x32xf32, #tpu.memory_space<vmem>>, %arg21: memref<1x1x32xf32, #tpu.memory_space<vmem>>, %arg22: memref<1x8x32xf32, #tpu.memory_space<vmem>>, %arg23: memref<8x32xf32, #tpu.memory_space<vmem>>) attributes {dimension_semantics = [#tpu.dimension_semantics<parallel>, #tpu.dimension_semantics<arbitrary>], iteration_bounds = array<i64: 2, 2>, scalar_prefetch = 0 : i64, scratch_operands = 1 : i64, tpu.core_type = #tpu.core_type<tc>, window_params = [{transform_indices = @transform_0, window_bounds = array<i64: 1, 1, 1>}, {transform_indices = @transform_1, window_bounds = array<i64: 1, 8, 32>}, {transform_indices = @transform_2, window_bounds = array<i64: 1, 8, 32>}, {pipeline_mode = #tpu.pipeline_mode<synchronous>, transform_indices = @transform_3, window_bounds = array<i64: 1, 32>}, {pipeline_mode = #tpu.pipeline_mode<synchronous>, transform_indices = @transform_4, window_bounds = array<i64: 1, 32>}, {transform_indices = @transform_5, window_bounds = array<i64: 1, 32, 96>}, {transform_indices = @transform_6, window_bounds = array<i64: 1, 32, 32>}, {transform_indices = @transform_7, window_bounds = array<i64: 1, 1, 32>}, {transform_indices = @transform_8, window_bounds = array<i64: 1, 1, 32>}, {transform_indices = @transform_9, window_bounds = array<i64: 1, 32, 32>}, {transform_indices = @transform_10, window_bounds = array<i64: 1, 32, 64>}, {transform_indices = @transform_11, window_bounds = array<i64: 1, 32, 32>}, {transform_indices = @transform_12, window_bounds = array<i64: 1, 1, 32>}, {transform_indices = @transform_13, window_bounds = array<i64: 1, 1, 32>}, {transform_indices = @transform_14, window_bounds = array<i64: 1, 32, 64>}, {transform_indices = @transform_15, window_bounds = array<i64: 1, 1, 64>}, {transform_indices = @transform_16, window_bounds = array<i64: 1, 64, 32>}, {transform_indices = @transform_17, window_bounds = array<i64: 1, 1, 32>}, {transform_indices = @transform_18, window_bounds = array<i64: 1, 1, 32>}, {transform_indices = @transform_19, window_bounds = array<i64: 1, 1, 32>}, {transform_indices = @transform_20, window_bounds = array<i64: 1, 8, 32>}]} {
    %c0_i32 = arith.constant 0 : i32
    %0 = arith.cmpi eq, %arg1, %c0_i32 : i32
    %1 = arith.extui %0 : i1 to i32
    %c0_i32_0 = arith.constant 0 : i32
    %2 = arith.cmpi ne, %1, %c0_i32_0 : i32
    scf.if %2 {
      %c0_123 = arith.constant 0 : index
      %c0_124 = arith.constant 0 : index
      %c0_125 = arith.constant 0 : index
      %315 = vector.load %arg3[%c0_123, %c0_124, %c0_125] : memref<1x8x32xf32, #tpu.memory_space<vmem>>, vector<1x8x32xf32>
      %316 = vector.shape_cast %315 : vector<1x8x32xf32> to vector<8x32xf32>
      %c0_126 = arith.constant 0 : index
      %c0_127 = arith.constant 0 : index
      %317 = vector.load %arg5[%c0_126, %c0_127] : memref<1x32xf32, #tpu.memory_space<vmem>>, vector<1x32xf32>
      %c0_128 = arith.constant 0 : index
      %c0_129 = arith.constant 0 : index
      %318 = vector.load %arg6[%c0_128, %c0_129] : memref<1x32xf32, #tpu.memory_space<vmem>>, vector<1x32xf32>
      %cst_130 = arith.constant dense<0.000000e+00> : vector<8xf32>
      %319 = vector.multi_reduction <add>, %316, %cst_130 [1] : vector<8x32xf32> to vector<8xf32>
      %320 = vector.shape_cast %319 : vector<8xf32> to vector<8x1xf32>
      %cst_131 = arith.constant 3.200000e+01 : f32
      %321 = vector.broadcast %cst_131 : f32 to vector<8x1xf32>
      %322 = arith.divf %320, %321 : vector<8x1xf32>
      %323 = vector.broadcast %322 : vector<8x1xf32> to vector<8x32xf32>
      %324 = arith.subf %316, %323 : vector<8x32xf32>
      %325 = arith.mulf %324, %324 : vector<8x32xf32>
      %cst_132 = arith.constant dense<0.000000e+00> : vector<8xf32>
      %326 = vector.multi_reduction <add>, %325, %cst_132 [1] : vector<8x32xf32> to vector<8xf32>
      %327 = vector.shape_cast %326 : vector<8xf32> to vector<8x1xf32>
      %cst_133 = arith.constant 3.200000e+01 : f32
      %328 = vector.broadcast %cst_133 : f32 to vector<8x1xf32>
      %329 = arith.divf %327, %328 : vector<8x1xf32>
      %330 = vector.broadcast %322 : vector<8x1xf32> to vector<8x32xf32>
      %331 = arith.subf %316, %330 : vector<8x32xf32>
      %cst_134 = arith.constant 9.99999997E-7 : f32
      %332 = vector.broadcast %cst_134 : f32 to vector<8x1xf32>
      %333 = arith.addf %329, %332 : vector<8x1xf32>
      %334 = math.rsqrt %333 : vector<8x1xf32>
      %335 = vector.broadcast %334 : vector<8x1xf32> to vector<8x32xf32>
      %336 = arith.mulf %331, %335 : vector<8x32xf32>
      %337 = vector.broadcast %317 : vector<1x32xf32> to vector<8x32xf32>
      %338 = arith.mulf %336, %337 : vector<8x32xf32>
      %339 = vector.broadcast %318 : vector<1x32xf32> to vector<8x32xf32>
      %340 = arith.addf %338, %339 : vector<8x32xf32>
      %c0_135 = arith.constant 0 : index
      %c0_136 = arith.constant 0 : index
      %341 = vector.load %arg23[%c0_135, %c0_136] : memref<8x32xf32, #tpu.memory_space<vmem>>, vector<8x32xf32>
      tpu.vector_store %arg23[%c0_135, %c0_136], %340 {strides = array<i32>} : memref<8x32xf32, #tpu.memory_space<vmem>>, vector<8x32xf32>,
    } else {
    }
    %c0 = arith.constant 0 : index
    %c0_1 = arith.constant 0 : index
    %3 = vector.load %arg23[%c0, %c0_1] : memref<8x32xf32, #tpu.memory_space<vmem>>, vector<8x32xf32>
    %4 = tpu.iota {dimensions = array<i32: 0>} : vector<8x8xi32>
    %5 = tpu.iota {dimensions = array<i32: 1>} : vector<8x8xi32>
    %c0_2 = arith.constant 0 : index
    %c0_3 = arith.constant 0 : index
    %c0_4 = arith.constant 0 : index
    %6 = vector.load %arg2[%c0_2, %c0_3, %c0_4] : memref<1x1x1xf32, #tpu.memory_space<vmem>>, vector<1x1x1xf32>
    %7 = vector.shape_cast %6 : vector<1x1x1xf32> to vector<1x1xf32>
    %8 = arith.subi %4, %5 : vector<8x8xi32>
    %9 = arith.sitofp %8 : vector<8x8xi32> to vector<8x8xf32>
    %10 = vector.broadcast %7 : vector<1x1xf32> to vector<8x8xf32>
    %11 = arith.mulf %10, %9 : vector<8x8xf32>
    %12 = arith.truncf %3 : vector<8x32xf32> to vector<8x32xbf16>
    %c0_5 = arith.constant 0 : index
    %c0_6 = arith.constant 0 : index
    %c0_7 = arith.constant 0 : index
    %13 = vector.load %arg7[%c0_5, %c0_6, %c0_7] : memref<1x32x96xbf16, #tpu.memory_space<vmem>>, vector<1x32x96xbf16>
    %14 = vector.shape_cast %13 : vector<1x32x96xbf16> to vector<32x96xbf16>
    %cst = arith.constant dense<0.000000e+00> : vector<8x96xf32>
    %15 = tpu.matmul %12, %14, %cst {dimension_numbers = #tpu.dot_dimension_numbers<[1], [0], [0], [1], [0, 0, 1, 1], [], []>} : vector<8x32xbf16>, vector<32x96xbf16>, vector<8x96xf32> -> vector<8x96xf32>
    %16 = vector.extract_strided_slice %15 {offsets = [0, 0], sizes = [8, 32], strides = [1, 1]} : vector<8x96xf32> to vector<8x32xf32>
    %17 = vector.extract_strided_slice %15 {offsets = [0, 32], sizes = [8, 32], strides = [1, 1]} : vector<8x96xf32> to vector<8x32xf32>
    %18 = vector.extract_strided_slice %15 {offsets = [0, 64], sizes = [8, 32], strides = [1, 1]} : vector<8x96xf32> to vector<8x32xf32>
    %c0_8 = arith.constant 0 : index
    %c0_9 = arith.constant 0 : index
    %c0_10 = arith.constant 0 : index
    %19 = vector.load %arg8[%c0_8, %c0_9, %c0_10] : memref<1x32x32xbf16, #tpu.memory_space<vmem>>, vector<1x32x32xbf16>
    %20 = vector.shape_cast %19 : vector<1x32x32xbf16> to vector<32x32xbf16>
    %c0_11 = arith.constant 0 : index
    %c0_12 = arith.constant 0 : index
    %c0_13 = arith.constant 0 : index
    %21 = vector.load %arg9[%c0_11, %c0_12, %c0_13] : memref<1x1x32xf32, #tpu.memory_space<vmem>>, vector<1x1x32xf32>
    %22 = vector.shape_cast %21 : vector<1x1x32xf32> to vector<1x32xf32>
    %c0_14 = arith.constant 0 : index
    %c0_15 = arith.constant 0 : index
    %c0_16 = arith.constant 0 : index
    %23 = vector.load %arg10[%c0_14, %c0_15, %c0_16] : memref<1x1x32xf32, #tpu.memory_space<vmem>>, vector<1x1x32xf32>
    %24 = vector.shape_cast %23 : vector<1x1x32xf32> to vector<1x32xf32>
    %25 = tpu.iota {dimensions = array<i32: 0>} : vector<8x32xi32>
    %c1_i32 = arith.constant 1 : i32
    %26 = tpu.dynamic_rotate %18 by %c1_i32 dim 0 : vector<8x32xf32>, i32 -> vector<8x32xf32>
    %c1_i32_17 = arith.constant 1 : i32
    %27 = vector.broadcast %c1_i32_17 : i32 to vector<8x32xi32>
    %28 = arith.cmpi sge, %25, %27 : vector<8x32xi32>
    %cst_18 = arith.constant 0.000000e+00 : f32
    %29 = vector.broadcast %cst_18 : f32 to vector<8x32xf32>
    %30 = arith.select %28, %26, %29 : vector<8x32xi1>, vector<8x32xf32>
    %31 = arith.addf %18, %30 : vector<8x32xf32>
    %c7_i32 = arith.constant 7 : i32
    %32 = tpu.dynamic_rotate %18 by %c7_i32 dim 0 : vector<8x32xf32>, i32 -> vector<8x32xf32>
    %c7_i32_19 = arith.constant 7 : i32
    %33 = vector.broadcast %c7_i32_19 : i32 to vector<8x32xi32>
    %34 = arith.cmpi slt, %25, %33 : vector<8x32xi32>
    %cst_20 = arith.constant 0.000000e+00 : f32
    %35 = vector.broadcast %cst_20 : f32 to vector<8x32xf32>
    %36 = arith.select %34, %32, %35 : vector<8x32xi1>, vector<8x32xf32>
    %37 = arith.addf %31, %36 : vector<8x32xf32>
    %cst_21 = arith.constant 0.333333343 : f32
    %38 = vector.broadcast %cst_21 : f32 to vector<8x32xf32>
    %39 = arith.mulf %37, %38 : vector<8x32xf32>
    %40 = arith.truncf %39 : vector<8x32xf32> to vector<8x32xbf16>
    %41 = arith.truncf %16 : vector<8x32xf32> to vector<8x32xbf16>
    %42 = arith.truncf %17 : vector<8x32xf32> to vector<8x32xbf16>
    %43 = vector.extract_strided_slice %41 {offsets = [0, 0], sizes = [8, 8], strides = [1, 1]} : vector<8x32xbf16> to vector<8x8xbf16>
    %44 = vector.extract_strided_slice %42 {offsets = [0, 0], sizes = [8, 8], strides = [1, 1]} : vector<8x32xbf16> to vector<8x8xbf16>
    %cst_22 = arith.constant dense<0.000000e+00> : vector<8x8xf32>
    %45 = tpu.matmul %43, %44, %cst_22 {dimension_numbers = #tpu.dot_dimension_numbers<[1], [1], [0], [0], [0, 0, 1, 0], [], []>} : vector<8x8xbf16>, vector<8x8xbf16>, vector<8x8xf32> -> vector<8x8xf32>
    %46 = arith.mulf %11, %45 : vector<8x8xf32>
    %cst_23 = arith.constant dense<0xFF800000> : vector<8xf32>
    %47 = vector.multi_reduction <maximumf>, %46, %cst_23 [1] : vector<8x8xf32> to vector<8xf32>
    %48 = vector.shape_cast %47 : vector<8xf32> to vector<8x1xf32>
    %49 = vector.broadcast %48 : vector<8x1xf32> to vector<8x8xf32>
    %50 = arith.subf %46, %49 : vector<8x8xf32>
    %51 = math.exp %50 : vector<8x8xf32>
    %cst_24 = arith.constant dense<0.000000e+00> : vector<8xf32>
    %52 = vector.multi_reduction <add>, %51, %cst_24 [1] : vector<8x8xf32> to vector<8xf32>
    %53 = vector.shape_cast %52 : vector<8xf32> to vector<8x1xf32>
    %54 = tpu.reciprocal %53 {approx = true} : vector<8x1xf32> -> vector<8x1xf32>
    %55 = vector.broadcast %54 : vector<8x1xf32> to vector<8x8xf32>
    %56 = arith.mulf %51, %55 : vector<8x8xf32>
    %57 = arith.truncf %56 : vector<8x8xf32> to vector<8x8xbf16>
    %58 = vector.extract_strided_slice %40 {offsets = [0, 0], sizes = [8, 8], strides = [1, 1]} : vector<8x32xbf16> to vector<8x8xbf16>
    %cst_25 = arith.constant dense<0.000000e+00> : vector<8x8xf32>
    %59 = tpu.matmul %57, %58, %cst_25 {dimension_numbers = #tpu.dot_dimension_numbers<[1], [0], [0], [1], [0, 0, 1, 1], [], []>} : vector<8x8xbf16>, vector<8x8xbf16>, vector<8x8xf32> -> vector<8x8xf32>
    %60 = vector.extract_strided_slice %41 {offsets = [0, 8], sizes = [8, 8], strides = [1, 1]} : vector<8x32xbf16> to vector<8x8xbf16>
    %61 = vector.extract_strided_slice %42 {offsets = [0, 8], sizes = [8, 8], strides = [1, 1]} : vector<8x32xbf16> to vector<8x8xbf16>
    %cst_26 = arith.constant dense<0.000000e+00> : vector<8x8xf32>
    %62 = tpu.matmul %60, %61, %cst_26 {dimension_numbers = #tpu.dot_dimension_numbers<[1], [1], [0], [0], [0, 0, 1, 0], [], []>} : vector<8x8xbf16>, vector<8x8xbf16>, vector<8x8xf32> -> vector<8x8xf32>
    %63 = arith.mulf %11, %62 : vector<8x8xf32>
    %cst_27 = arith.constant dense<0xFF800000> : vector<8xf32>
    %64 = vector.multi_reduction <maximumf>, %63, %cst_27 [1] : vector<8x8xf32> to vector<8xf32>
    %65 = vector.shape_cast %64 : vector<8xf32> to vector<8x1xf32>
    %66 = vector.broadcast %65 : vector<8x1xf32> to vector<8x8xf32>
    %67 = arith.subf %63, %66 : vector<8x8xf32>
    %68 = math.exp %67 : vector<8x8xf32>
    %cst_28 = arith.constant dense<0.000000e+00> : vector<8xf32>
    %69 = vector.multi_reduction <add>, %68, %cst_28 [1] : vector<8x8xf32> to vector<8xf32>
    %70 = vector.shape_cast %69 : vector<8xf32> to vector<8x1xf32>
    %71 = tpu.reciprocal %70 {approx = true} : vector<8x1xf32> -> vector<8x1xf32>
    %72 = vector.broadcast %71 : vector<8x1xf32> to vector<8x8xf32>
    %73 = arith.mulf %68, %72 : vector<8x8xf32>
    %74 = arith.truncf %73 : vector<8x8xf32> to vector<8x8xbf16>
    %75 = vector.extract_strided_slice %40 {offsets = [0, 8], sizes = [8, 8], strides = [1, 1]} : vector<8x32xbf16> to vector<8x8xbf16>
    %cst_29 = arith.constant dense<0.000000e+00> : vector<8x8xf32>
    %76 = tpu.matmul %74, %75, %cst_29 {dimension_numbers = #tpu.dot_dimension_numbers<[1], [0], [0], [1], [0, 0, 1, 1], [], []>} : vector<8x8xbf16>, vector<8x8xbf16>, vector<8x8xf32> -> vector<8x8xf32>
    %77 = vector.extract_strided_slice %41 {offsets = [0, 16], sizes = [8, 8], strides = [1, 1]} : vector<8x32xbf16> to vector<8x8xbf16>
    %78 = vector.extract_strided_slice %42 {offsets = [0, 16], sizes = [8, 8], strides = [1, 1]} : vector<8x32xbf16> to vector<8x8xbf16>
    %cst_30 = arith.constant dense<0.000000e+00> : vector<8x8xf32>
    %79 = tpu.matmul %77, %78, %cst_30 {dimension_numbers = #tpu.dot_dimension_numbers<[1], [1], [0], [0], [0, 0, 1, 0], [], []>} : vector<8x8xbf16>, vector<8x8xbf16>, vector<8x8xf32> -> vector<8x8xf32>
    %80 = arith.mulf %11, %79 : vector<8x8xf32>
    %cst_31 = arith.constant dense<0xFF800000> : vector<8xf32>
    %81 = vector.multi_reduction <maximumf>, %80, %cst_31 [1] : vector<8x8xf32> to vector<8xf32>
    %82 = vector.shape_cast %81 : vector<8xf32> to vector<8x1xf32>
    %83 = vector.broadcast %82 : vector<8x1xf32> to vector<8x8xf32>
    %84 = arith.subf %80, %83 : vector<8x8xf32>
    %85 = math.exp %84 : vector<8x8xf32>
    %cst_32 = arith.constant dense<0.000000e+00> : vector<8xf32>
    %86 = vector.multi_reduction <add>, %85, %cst_32 [1] : vector<8x8xf32> to vector<8xf32>
    %87 = vector.shape_cast %86 : vector<8xf32> to vector<8x1xf32>
    %88 = tpu.reciprocal %87 {approx = true} : vector<8x1xf32> -> vector<8x1xf32>
    %89 = vector.broadcast %88 : vector<8x1xf32> to vector<8x8xf32>
    %90 = arith.mulf %85, %89 : vector<8x8xf32>
    %91 = arith.truncf %90 : vector<8x8xf32> to vector<8x8xbf16>
    %92 = vector.extract_strided_slice %40 {offsets = [0, 16], sizes = [8, 8], strides = [1, 1]} : vector<8x32xbf16> to vector<8x8xbf16>
    %cst_33 = arith.constant dense<0.000000e+00> : vector<8x8xf32>
    %93 = tpu.matmul %91, %92, %cst_33 {dimension_numbers = #tpu.dot_dimension_numbers<[1], [0], [0], [1], [0, 0, 1, 1], [], []>} : vector<8x8xbf16>, vector<8x8xbf16>, vector<8x8xf32> -> vector<8x8xf32>
    %94 = vector.extract_strided_slice %41 {offsets = [0, 24], sizes = [8, 8], strides = [1, 1]} : vector<8x32xbf16> to vector<8x8xbf16>
    %95 = vector.extract_strided_slice %42 {offsets = [0, 24], sizes = [8, 8], strides = [1, 1]} : vector<8x32xbf16> to vector<8x8xbf16>
    %cst_34 = arith.constant dense<0.000000e+00> : vector<8x8xf32>
    %96 = tpu.matmul %94, %95, %cst_34 {dimension_numbers = #tpu.dot_dimension_numbers<[1], [1], [0], [0], [0, 0, 1, 0], [], []>} : vector<8x8xbf16>, vector<8x8xbf16>, vector<8x8xf32> -> vector<8x8xf32>
    %97 = arith.mulf %11, %96 : vector<8x8xf32>
    %cst_35 = arith.constant dense<0xFF800000> : vector<8xf32>
    %98 = vector.multi_reduction <maximumf>, %97, %cst_35 [1] : vector<8x8xf32> to vector<8xf32>
    %99 = vector.shape_cast %98 : vector<8xf32> to vector<8x1xf32>
    %100 = vector.broadcast %99 : vector<8x1xf32> to vector<8x8xf32>
    %101 = arith.subf %97, %100 : vector<8x8xf32>
    %102 = math.exp %101 : vector<8x8xf32>
    %cst_36 = arith.constant dense<0.000000e+00> : vector<8xf32>
    %103 = vector.multi_reduction <add>, %102, %cst_36 [1] : vector<8x8xf32> to vector<8xf32>
    %104 = vector.shape_cast %103 : vector<8xf32> to vector<8x1xf32>
    %105 = tpu.reciprocal %104 {approx = true} : vector<8x1xf32> -> vector<8x1xf32>
    %106 = vector.broadcast %105 : vector<8x1xf32> to vector<8x8xf32>
    %107 = arith.mulf %102, %106 : vector<8x8xf32>
    %108 = arith.truncf %107 : vector<8x8xf32> to vector<8x8xbf16>
    %109 = vector.extract_strided_slice %40 {offsets = [0, 24], sizes = [8, 8], strides = [1, 1]} : vector<8x32xbf16> to vector<8x8xbf16>
    %cst_37 = arith.constant dense<0.000000e+00> : vector<8x8xf32>
    %110 = tpu.matmul %108, %109, %cst_37 {dimension_numbers = #tpu.dot_dimension_numbers<[1], [0], [0], [1], [0, 0, 1, 1], [], []>} : vector<8x8xbf16>, vector<8x8xbf16>, vector<8x8xf32> -> vector<8x8xf32>
    %111 = tpu.concatenate %59, %76, %93, %110 in 1 : vector<8x8xf32>, vector<8x8xf32>, vector<8x8xf32>, vector<8x8xf32> -> vector<8x32xf32>
    %112 = arith.truncf %111 : vector<8x32xf32> to vector<8x32xbf16>
    %cst_38 = arith.constant dense<0.000000e+00> : vector<8x32xf32>
    %113 = tpu.matmul %112, %20, %cst_38 {dimension_numbers = #tpu.dot_dimension_numbers<[1], [0], [0], [1], [0, 0, 1, 1], [], []>} : vector<8x32xbf16>, vector<32x32xbf16>, vector<8x32xf32> -> vector<8x32xf32>
    %114 = arith.addf %3, %113 : vector<8x32xf32>
    %cst_39 = arith.constant dense<0.000000e+00> : vector<8xf32>
    %115 = vector.multi_reduction <add>, %114, %cst_39 [1] : vector<8x32xf32> to vector<8xf32>
    %116 = vector.shape_cast %115 : vector<8xf32> to vector<8x1xf32>
    %cst_40 = arith.constant 3.200000e+01 : f32
    %117 = vector.broadcast %cst_40 : f32 to vector<8x1xf32>
    %118 = arith.divf %116, %117 : vector<8x1xf32>
    %119 = vector.broadcast %118 : vector<8x1xf32> to vector<8x32xf32>
    %120 = arith.subf %114, %119 : vector<8x32xf32>
    %121 = arith.mulf %120, %120 : vector<8x32xf32>
    %cst_41 = arith.constant dense<0.000000e+00> : vector<8xf32>
    %122 = vector.multi_reduction <add>, %121, %cst_41 [1] : vector<8x32xf32> to vector<8xf32>
    %123 = vector.shape_cast %122 : vector<8xf32> to vector<8x1xf32>
    %cst_42 = arith.constant 3.200000e+01 : f32
    %124 = vector.broadcast %cst_42 : f32 to vector<8x1xf32>
    %125 = arith.divf %123, %124 : vector<8x1xf32>
    %126 = vector.broadcast %118 : vector<8x1xf32> to vector<8x32xf32>
    %127 = arith.subf %114, %126 : vector<8x32xf32>
    %cst_43 = arith.constant 9.99999997E-7 : f32
    %128 = vector.broadcast %cst_43 : f32 to vector<8x1xf32>
    %129 = arith.addf %125, %128 : vector<8x1xf32>
    %130 = math.rsqrt %129 : vector<8x1xf32>
    %131 = vector.broadcast %130 : vector<8x1xf32> to vector<8x32xf32>
    %132 = arith.mulf %127, %131 : vector<8x32xf32>
    %133 = vector.broadcast %22 : vector<1x32xf32> to vector<8x32xf32>
    %134 = arith.mulf %132, %133 : vector<8x32xf32>
    %135 = vector.broadcast %24 : vector<1x32xf32> to vector<8x32xf32>
    %136 = arith.addf %134, %135 : vector<8x32xf32>
    %c0_44 = arith.constant 0 : index
    %c0_45 = arith.constant 0 : index
    %c0_46 = arith.constant 0 : index
    %137 = vector.load %arg4[%c0_44, %c0_45, %c0_46] : memref<1x8x32xbf16, #tpu.memory_space<vmem>>, vector<1x8x32xbf16>
    %138 = vector.shape_cast %137 : vector<1x8x32xbf16> to vector<8x32xbf16>
    %139 = arith.truncf %136 : vector<8x32xf32> to vector<8x32xbf16>
    %c0_47 = arith.constant 0 : index
    %c0_48 = arith.constant 0 : index
    %c0_49 = arith.constant 0 : index
    %140 = vector.load %arg11[%c0_47, %c0_48, %c0_49] : memref<1x32x32xbf16, #tpu.memory_space<vmem>>, vector<1x32x32xbf16>
    %141 = vector.shape_cast %140 : vector<1x32x32xbf16> to vector<32x32xbf16>
    %cst_50 = arith.constant dense<0.000000e+00> : vector<8x32xf32>
    %142 = tpu.matmul %139, %141, %cst_50 {dimension_numbers = #tpu.dot_dimension_numbers<[1], [0], [0], [1], [0, 0, 1, 1], [], []>} : vector<8x32xbf16>, vector<32x32xbf16>, vector<8x32xf32> -> vector<8x32xf32>
    %c0_51 = arith.constant 0 : index
    %c0_52 = arith.constant 0 : index
    %c0_53 = arith.constant 0 : index
    %143 = vector.load %arg12[%c0_51, %c0_52, %c0_53] : memref<1x32x64xbf16, #tpu.memory_space<vmem>>, vector<1x32x64xbf16>
    %144 = vector.shape_cast %143 : vector<1x32x64xbf16> to vector<32x64xbf16>
    %cst_54 = arith.constant dense<0.000000e+00> : vector<8x64xf32>
    %145 = tpu.matmul %138, %144, %cst_54 {dimension_numbers = #tpu.dot_dimension_numbers<[1], [0], [0], [1], [0, 0, 1, 1], [], []>} : vector<8x32xbf16>, vector<32x64xbf16>, vector<8x64xf32> -> vector<8x64xf32>
    %146 = vector.extract_strided_slice %145 {offsets = [0, 0], sizes = [8, 32], strides = [1, 1]} : vector<8x64xf32> to vector<8x32xf32>
    %147 = vector.extract_strided_slice %145 {offsets = [0, 32], sizes = [8, 32], strides = [1, 1]} : vector<8x64xf32> to vector<8x32xf32>
    %c0_55 = arith.constant 0 : index
    %c0_56 = arith.constant 0 : index
    %c0_57 = arith.constant 0 : index
    %148 = vector.load %arg13[%c0_55, %c0_56, %c0_57] : memref<1x32x32xbf16, #tpu.memory_space<vmem>>, vector<1x32x32xbf16>
    %149 = vector.shape_cast %148 : vector<1x32x32xbf16> to vector<32x32xbf16>
    %c0_58 = arith.constant 0 : index
    %c0_59 = arith.constant 0 : index
    %c0_60 = arith.constant 0 : index
    %150 = vector.load %arg14[%c0_58, %c0_59, %c0_60] : memref<1x1x32xf32, #tpu.memory_space<vmem>>, vector<1x1x32xf32>
    %151 = vector.shape_cast %150 : vector<1x1x32xf32> to vector<1x32xf32>
    %c0_61 = arith.constant 0 : index
    %c0_62 = arith.constant 0 : index
    %c0_63 = arith.constant 0 : index
    %152 = vector.load %arg15[%c0_61, %c0_62, %c0_63] : memref<1x1x32xf32, #tpu.memory_space<vmem>>, vector<1x1x32xf32>
    %153 = vector.shape_cast %152 : vector<1x1x32xf32> to vector<1x32xf32>
    %154 = tpu.iota {dimensions = array<i32: 0>} : vector<8x32xi32>
    %c1_i32_64 = arith.constant 1 : i32
    %155 = tpu.dynamic_rotate %147 by %c1_i32_64 dim 0 : vector<8x32xf32>, i32 -> vector<8x32xf32>
    %c1_i32_65 = arith.constant 1 : i32
    %156 = vector.broadcast %c1_i32_65 : i32 to vector<8x32xi32>
    %157 = arith.cmpi sge, %154, %156 : vector<8x32xi32>
    %cst_66 = arith.constant 0.000000e+00 : f32
    %158 = vector.broadcast %cst_66 : f32 to vector<8x32xf32>
    %159 = arith.select %157, %155, %158 : vector<8x32xi1>, vector<8x32xf32>
    %160 = arith.addf %147, %159 : vector<8x32xf32>
    %c7_i32_67 = arith.constant 7 : i32
    %161 = tpu.dynamic_rotate %147 by %c7_i32_67 dim 0 : vector<8x32xf32>, i32 -> vector<8x32xf32>
    %c7_i32_68 = arith.constant 7 : i32
    %162 = vector.broadcast %c7_i32_68 : i32 to vector<8x32xi32>
    %163 = arith.cmpi slt, %154, %162 : vector<8x32xi32>
    %cst_69 = arith.constant 0.000000e+00 : f32
    %164 = vector.broadcast %cst_69 : f32 to vector<8x32xf32>
    %165 = arith.select %163, %161, %164 : vector<8x32xi1>, vector<8x32xf32>
    %166 = arith.addf %160, %165 : vector<8x32xf32>
    %cst_70 = arith.constant 0.333333343 : f32
    %167 = vector.broadcast %cst_70 : f32 to vector<8x32xf32>
    %168 = arith.mulf %166, %167 : vector<8x32xf32>
    %169 = arith.truncf %168 : vector<8x32xf32> to vector<8x32xbf16>
    %170 = arith.truncf %142 : vector<8x32xf32> to vector<8x32xbf16>
    %171 = arith.truncf %146 : vector<8x32xf32> to vector<8x32xbf16>
    %172 = vector.extract_strided_slice %170 {offsets = [0, 0], sizes = [8, 8], strides = [1, 1]} : vector<8x32xbf16> to vector<8x8xbf16>
    %173 = vector.extract_strided_slice %171 {offsets = [0, 0], sizes = [8, 8], strides = [1, 1]} : vector<8x32xbf16> to vector<8x8xbf16>
    %cst_71 = arith.constant dense<0.000000e+00> : vector<8x8xf32>
    %174 = tpu.matmul %172, %173, %cst_71 {dimension_numbers = #tpu.dot_dimension_numbers<[1], [1], [0], [0], [0, 0, 1, 0], [], []>} : vector<8x8xbf16>, vector<8x8xbf16>, vector<8x8xf32> -> vector<8x8xf32>
    %175 = arith.mulf %11, %174 : vector<8x8xf32>
    %cst_72 = arith.constant dense<0xFF800000> : vector<8xf32>
    %176 = vector.multi_reduction <maximumf>, %175, %cst_72 [1] : vector<8x8xf32> to vector<8xf32>
    %177 = vector.shape_cast %176 : vector<8xf32> to vector<8x1xf32>
    %178 = vector.broadcast %177 : vector<8x1xf32> to vector<8x8xf32>
    %179 = arith.subf %175, %178 : vector<8x8xf32>
    %180 = math.exp %179 : vector<8x8xf32>
    %cst_73 = arith.constant dense<0.000000e+00> : vector<8xf32>
    %181 = vector.multi_reduction <add>, %180, %cst_73 [1] : vector<8x8xf32> to vector<8xf32>
    %182 = vector.shape_cast %181 : vector<8xf32> to vector<8x1xf32>
    %183 = tpu.reciprocal %182 {approx = true} : vector<8x1xf32> -> vector<8x1xf32>
    %184 = vector.broadcast %183 : vector<8x1xf32> to vector<8x8xf32>
    %185 = arith.mulf %180, %184 : vector<8x8xf32>
    %186 = arith.truncf %185 : vector<8x8xf32> to vector<8x8xbf16>
    %187 = vector.extract_strided_slice %169 {offsets = [0, 0], sizes = [8, 8], strides = [1, 1]} : vector<8x32xbf16> to vector<8x8xbf16>
    %cst_74 = arith.constant dense<0.000000e+00> : vector<8x8xf32>
    %188 = tpu.matmul %186, %187, %cst_74 {dimension_numbers = #tpu.dot_dimension_numbers<[1], [0], [0], [1], [0, 0, 1, 1], [], []>} : vector<8x8xbf16>, vector<8x8xbf16>, vector<8x8xf32> -> vector<8x8xf32>
    %189 = vector.extract_strided_slice %170 {offsets = [0, 8], sizes = [8, 8], strides = [1, 1]} : vector<8x32xbf16> to vector<8x8xbf16>
    %190 = vector.extract_strided_slice %171 {offsets = [0, 8], sizes = [8, 8], strides = [1, 1]} : vector<8x32xbf16> to vector<8x8xbf16>
    %cst_75 = arith.constant dense<0.000000e+00> : vector<8x8xf32>
    %191 = tpu.matmul %189, %190, %cst_75 {dimension_numbers = #tpu.dot_dimension_numbers<[1], [1], [0], [0], [0, 0, 1, 0], [], []>} : vector<8x8xbf16>, vector<8x8xbf16>, vector<8x8xf32> -> vector<8x8xf32>
    %192 = arith.mulf %11, %191 : vector<8x8xf32>
    %cst_76 = arith.constant dense<0xFF800000> : vector<8xf32>
    %193 = vector.multi_reduction <maximumf>, %192, %cst_76 [1] : vector<8x8xf32> to vector<8xf32>
    %194 = vector.shape_cast %193 : vector<8xf32> to vector<8x1xf32>
    %195 = vector.broadcast %194 : vector<8x1xf32> to vector<8x8xf32>
    %196 = arith.subf %192, %195 : vector<8x8xf32>
    %197 = math.exp %196 : vector<8x8xf32>
    %cst_77 = arith.constant dense<0.000000e+00> : vector<8xf32>
    %198 = vector.multi_reduction <add>, %197, %cst_77 [1] : vector<8x8xf32> to vector<8xf32>
    %199 = vector.shape_cast %198 : vector<8xf32> to vector<8x1xf32>
    %200 = tpu.reciprocal %199 {approx = true} : vector<8x1xf32> -> vector<8x1xf32>
    %201 = vector.broadcast %200 : vector<8x1xf32> to vector<8x8xf32>
    %202 = arith.mulf %197, %201 : vector<8x8xf32>
    %203 = arith.truncf %202 : vector<8x8xf32> to vector<8x8xbf16>
    %204 = vector.extract_strided_slice %169 {offsets = [0, 8], sizes = [8, 8], strides = [1, 1]} : vector<8x32xbf16> to vector<8x8xbf16>
    %cst_78 = arith.constant dense<0.000000e+00> : vector<8x8xf32>
    %205 = tpu.matmul %203, %204, %cst_78 {dimension_numbers = #tpu.dot_dimension_numbers<[1], [0], [0], [1], [0, 0, 1, 1], [], []>} : vector<8x8xbf16>, vector<8x8xbf16>, vector<8x8xf32> -> vector<8x8xf32>
    %206 = vector.extract_strided_slice %170 {offsets = [0, 16], sizes = [8, 8], strides = [1, 1]} : vector<8x32xbf16> to vector<8x8xbf16>
    %207 = vector.extract_strided_slice %171 {offsets = [0, 16], sizes = [8, 8], strides = [1, 1]} : vector<8x32xbf16> to vector<8x8xbf16>
    %cst_79 = arith.constant dense<0.000000e+00> : vector<8x8xf32>
    %208 = tpu.matmul %206, %207, %cst_79 {dimension_numbers = #tpu.dot_dimension_numbers<[1], [1], [0], [0], [0, 0, 1, 0], [], []>} : vector<8x8xbf16>, vector<8x8xbf16>, vector<8x8xf32> -> vector<8x8xf32>
    %209 = arith.mulf %11, %208 : vector<8x8xf32>
    %cst_80 = arith.constant dense<0xFF800000> : vector<8xf32>
    %210 = vector.multi_reduction <maximumf>, %209, %cst_80 [1] : vector<8x8xf32> to vector<8xf32>
    %211 = vector.shape_cast %210 : vector<8xf32> to vector<8x1xf32>
    %212 = vector.broadcast %211 : vector<8x1xf32> to vector<8x8xf32>
    %213 = arith.subf %209, %212 : vector<8x8xf32>
    %214 = math.exp %213 : vector<8x8xf32>
    %cst_81 = arith.constant dense<0.000000e+00> : vector<8xf32>
    %215 = vector.multi_reduction <add>, %214, %cst_81 [1] : vector<8x8xf32> to vector<8xf32>
    %216 = vector.shape_cast %215 : vector<8xf32> to vector<8x1xf32>
    %217 = tpu.reciprocal %216 {approx = true} : vector<8x1xf32> -> vector<8x1xf32>
    %218 = vector.broadcast %217 : vector<8x1xf32> to vector<8x8xf32>
    %219 = arith.mulf %214, %218 : vector<8x8xf32>
    %220 = arith.truncf %219 : vector<8x8xf32> to vector<8x8xbf16>
    %221 = vector.extract_strided_slice %169 {offsets = [0, 16], sizes = [8, 8], strides = [1, 1]} : vector<8x32xbf16> to vector<8x8xbf16>
    %cst_82 = arith.constant dense<0.000000e+00> : vector<8x8xf32>
    %222 = tpu.matmul %220, %221, %cst_82 {dimension_numbers = #tpu.dot_dimension_numbers<[1], [0], [0], [1], [0, 0, 1, 1], [], []>} : vector<8x8xbf16>, vector<8x8xbf16>, vector<8x8xf32> -> vector<8x8xf32>
    %223 = vector.extract_strided_slice %170 {offsets = [0, 24], sizes = [8, 8], strides = [1, 1]} : vector<8x32xbf16> to vector<8x8xbf16>
    %224 = vector.extract_strided_slice %171 {offsets = [0, 24], sizes = [8, 8], strides = [1, 1]} : vector<8x32xbf16> to vector<8x8xbf16>
    %cst_83 = arith.constant dense<0.000000e+00> : vector<8x8xf32>
    %225 = tpu.matmul %223, %224, %cst_83 {dimension_numbers = #tpu.dot_dimension_numbers<[1], [1], [0], [0], [0, 0, 1, 0], [], []>} : vector<8x8xbf16>, vector<8x8xbf16>, vector<8x8xf32> -> vector<8x8xf32>
    %226 = arith.mulf %11, %225 : vector<8x8xf32>
    %cst_84 = arith.constant dense<0xFF800000> : vector<8xf32>
    %227 = vector.multi_reduction <maximumf>, %226, %cst_84 [1] : vector<8x8xf32> to vector<8xf32>
    %228 = vector.shape_cast %227 : vector<8xf32> to vector<8x1xf32>
    %229 = vector.broadcast %228 : vector<8x1xf32> to vector<8x8xf32>
    %230 = arith.subf %226, %229 : vector<8x8xf32>
    %231 = math.exp %230 : vector<8x8xf32>
    %cst_85 = arith.constant dense<0.000000e+00> : vector<8xf32>
    %232 = vector.multi_reduction <add>, %231, %cst_85 [1] : vector<8x8xf32> to vector<8xf32>
    %233 = vector.shape_cast %232 : vector<8xf32> to vector<8x1xf32>
    %234 = tpu.reciprocal %233 {approx = true} : vector<8x1xf32> -> vector<8x1xf32>
    %235 = vector.broadcast %234 : vector<8x1xf32> to vector<8x8xf32>
    %236 = arith.mulf %231, %235 : vector<8x8xf32>
    %237 = arith.truncf %236 : vector<8x8xf32> to vector<8x8xbf16>
    %238 = vector.extract_strided_slice %169 {offsets = [0, 24], sizes = [8, 8], strides = [1, 1]} : vector<8x32xbf16> to vector<8x8xbf16>
    %cst_86 = arith.constant dense<0.000000e+00> : vector<8x8xf32>
    %239 = tpu.matmul %237, %238, %cst_86 {dimension_numbers = #tpu.dot_dimension_numbers<[1], [0], [0], [1], [0, 0, 1, 1], [], []>} : vector<8x8xbf16>, vector<8x8xbf16>, vector<8x8xf32> -> vector<8x8xf32>
    %240 = tpu.concatenate %188, %205, %222, %239 in 1 : vector<8x8xf32>, vector<8x8xf32>, vector<8x8xf32>, vector<8x8xf32> -> vector<8x32xf32>
    %241 = arith.truncf %240 : vector<8x32xf32> to vector<8x32xbf16>
    %cst_87 = arith.constant dense<0.000000e+00> : vector<8x32xf32>
    %242 = tpu.matmul %241, %149, %cst_87 {dimension_numbers = #tpu.dot_dimension_numbers<[1], [0], [0], [1], [0, 0, 1, 1], [], []>} : vector<8x32xbf16>, vector<32x32xbf16>, vector<8x32xf32> -> vector<8x32xf32>
    %243 = arith.addf %136, %242 : vector<8x32xf32>
    %cst_88 = arith.constant dense<0.000000e+00> : vector<8xf32>
    %244 = vector.multi_reduction <add>, %243, %cst_88 [1] : vector<8x32xf32> to vector<8xf32>
    %245 = vector.shape_cast %244 : vector<8xf32> to vector<8x1xf32>
    %cst_89 = arith.constant 3.200000e+01 : f32
    %246 = vector.broadcast %cst_89 : f32 to vector<8x1xf32>
    %247 = arith.divf %245, %246 : vector<8x1xf32>
    %248 = vector.broadcast %247 : vector<8x1xf32> to vector<8x32xf32>
    %249 = arith.subf %243, %248 : vector<8x32xf32>
    %250 = arith.mulf %249, %249 : vector<8x32xf32>
    %cst_90 = arith.constant dense<0.000000e+00> : vector<8xf32>
    %251 = vector.multi_reduction <add>, %250, %cst_90 [1] : vector<8x32xf32> to vector<8xf32>
    %252 = vector.shape_cast %251 : vector<8xf32> to vector<8x1xf32>
    %cst_91 = arith.constant 3.200000e+01 : f32
    %253 = vector.broadcast %cst_91 : f32 to vector<8x1xf32>
    %254 = arith.divf %252, %253 : vector<8x1xf32>
    %255 = vector.broadcast %247 : vector<8x1xf32> to vector<8x32xf32>
    %256 = arith.subf %243, %255 : vector<8x32xf32>
    %cst_92 = arith.constant 9.99999997E-7 : f32
    %257 = vector.broadcast %cst_92 : f32 to vector<8x1xf32>
    %258 = arith.addf %254, %257 : vector<8x1xf32>
    %259 = math.rsqrt %258 : vector<8x1xf32>
    %260 = vector.broadcast %259 : vector<8x1xf32> to vector<8x32xf32>
    %261 = arith.mulf %256, %260 : vector<8x32xf32>
    %262 = vector.broadcast %151 : vector<1x32xf32> to vector<8x32xf32>
    %263 = arith.mulf %261, %262 : vector<8x32xf32>
    %264 = vector.broadcast %153 : vector<1x32xf32> to vector<8x32xf32>
    %265 = arith.addf %263, %264 : vector<8x32xf32>
    %266 = arith.truncf %265 : vector<8x32xf32> to vector<8x32xbf16>
    %c0_93 = arith.constant 0 : index
    %c0_94 = arith.constant 0 : index
    %c0_95 = arith.constant 0 : index
    %267 = vector.load %arg16[%c0_93, %c0_94, %c0_95] : memref<1x32x64xbf16, #tpu.memory_space<vmem>>, vector<1x32x64xbf16>
    %268 = vector.shape_cast %267 : vector<1x32x64xbf16> to vector<32x64xbf16>
    %cst_96 = arith.constant dense<0.000000e+00> : vector<8x64xf32>
    %269 = tpu.matmul %266, %268, %cst_96 {dimension_numbers = #tpu.dot_dimension_numbers<[1], [0], [0], [1], [0, 0, 1, 1], [], []>} : vector<8x32xbf16>, vector<32x64xbf16>, vector<8x64xf32> -> vector<8x64xf32>
    %c0_97 = arith.constant 0 : index
    %c0_98 = arith.constant 0 : index
    %c0_99 = arith.constant 0 : index
    %270 = vector.load %arg17[%c0_97, %c0_98, %c0_99] : memref<1x1x64xf32, #tpu.memory_space<vmem>>, vector<1x1x64xf32>
    %271 = vector.shape_cast %270 : vector<1x1x64xf32> to vector<1x64xf32>
    %272 = vector.broadcast %271 : vector<1x64xf32> to vector<8x64xf32>
    %273 = arith.addf %269, %272 : vector<8x64xf32>
    %cst_100 = arith.constant 0.000000e+00 : f32
    %274 = vector.broadcast %cst_100 : f32 to vector<8x64xf32>
    %275 = arith.maximumf %273, %274 : vector<8x64xf32>
    %276 = arith.truncf %275 : vector<8x64xf32> to vector<8x64xbf16>
    %c0_101 = arith.constant 0 : index
    %c0_102 = arith.constant 0 : index
    %c0_103 = arith.constant 0 : index
    %277 = vector.load %arg18[%c0_101, %c0_102, %c0_103] : memref<1x64x32xbf16, #tpu.memory_space<vmem>>, vector<1x64x32xbf16>
    %278 = vector.shape_cast %277 : vector<1x64x32xbf16> to vector<64x32xbf16>
    %cst_104 = arith.constant dense<0.000000e+00> : vector<8x32xf32>
    %279 = tpu.matmul %276, %278, %cst_104 {dimension_numbers = #tpu.dot_dimension_numbers<[1], [0], [0], [1], [0, 0, 1, 1], [], []>} : vector<8x64xbf16>, vector<64x32xbf16>, vector<8x32xf32> -> vector<8x32xf32>
    %c0_105 = arith.constant 0 : index
    %c0_106 = arith.constant 0 : index
    %c0_107 = arith.constant 0 : index
    %280 = vector.load %arg19[%c0_105, %c0_106, %c0_107] : memref<1x1x32xf32, #tpu.memory_space<vmem>>, vector<1x1x32xf32>
    %281 = vector.shape_cast %280 : vector<1x1x32xf32> to vector<1x32xf32>
    %282 = vector.broadcast %281 : vector<1x32xf32> to vector<8x32xf32>
    %283 = arith.addf %279, %282 : vector<8x32xf32>
    %284 = arith.addf %283, %265 : vector<8x32xf32>
    %c0_108 = arith.constant 0 : index
    %c0_109 = arith.constant 0 : index
    %c0_110 = arith.constant 0 : index
    %285 = vector.load %arg20[%c0_108, %c0_109, %c0_110] : memref<1x1x32xf32, #tpu.memory_space<vmem>>, vector<1x1x32xf32>
    %286 = vector.shape_cast %285 : vector<1x1x32xf32> to vector<1x32xf32>
    %c0_111 = arith.constant 0 : index
    %c0_112 = arith.constant 0 : index
    %c0_113 = arith.constant 0 : index
    %287 = vector.load %arg21[%c0_111, %c0_112, %c0_113] : memref<1x1x32xf32, #tpu.memory_space<vmem>>, vector<1x1x32xf32>
    %288 = vector.shape_cast %287 : vector<1x1x32xf32> to vector<1x32xf32>
    %cst_114 = arith.constant dense<0.000000e+00> : vector<8xf32>
    %289 = vector.multi_reduction <add>, %284, %cst_114 [1] : vector<8x32xf32> to vector<8xf32>
    %290 = vector.shape_cast %289 : vector<8xf32> to vector<8x1xf32>
    %cst_115 = arith.constant 3.200000e+01 : f32
    %291 = vector.broadcast %cst_115 : f32 to vector<8x1xf32>
    %292 = arith.divf %290, %291 : vector<8x1xf32>
    %293 = vector.broadcast %292 : vector<8x1xf32> to vector<8x32xf32>
    %294 = arith.subf %284, %293 : vector<8x32xf32>
    %295 = arith.mulf %294, %294 : vector<8x32xf32>
    %cst_116 = arith.constant dense<0.000000e+00> : vector<8xf32>
    %296 = vector.multi_reduction <add>, %295, %cst_116 [1] : vector<8x32xf32> to vector<8xf32>
    %297 = vector.shape_cast %296 : vector<8xf32> to vector<8x1xf32>
    %cst_117 = arith.constant 3.200000e+01 : f32
    %298 = vector.broadcast %cst_117 : f32 to vector<8x1xf32>
    %299 = arith.divf %297, %298 : vector<8x1xf32>
    %300 = vector.broadcast %292 : vector<8x1xf32> to vector<8x32xf32>
    %301 = arith.subf %284, %300 : vector<8x32xf32>
    %cst_118 = arith.constant 9.99999997E-7 : f32
    %302 = vector.broadcast %cst_118 : f32 to vector<8x1xf32>
    %303 = arith.addf %299, %302 : vector<8x1xf32>
    %304 = math.rsqrt %303 : vector<8x1xf32>
    %305 = vector.broadcast %304 : vector<8x1xf32> to vector<8x32xf32>
    %306 = arith.mulf %301, %305 : vector<8x32xf32>
    %307 = vector.broadcast %286 : vector<1x32xf32> to vector<8x32xf32>
    %308 = arith.mulf %306, %307 : vector<8x32xf32>
    %309 = vector.broadcast %288 : vector<1x32xf32> to vector<8x32xf32>
    %310 = arith.addf %308, %309 : vector<8x32xf32>
    %c0_119 = arith.constant 0 : index
    %c0_120 = arith.constant 0 : index
    %311 = vector.load %arg23[%c0_119, %c0_120] : memref<8x32xf32, #tpu.memory_space<vmem>>, vector<8x32xf32>
    tpu.vector_store %arg23[%c0_119, %c0_120], %310 {strides = array<i32>} : memref<8x32xf32, #tpu.memory_space<vmem>>, vector<8x32xf32>,
    %c1_i32_121 = arith.constant 1 : i32
    %312 = arith.cmpi eq, %arg1, %c1_i32_121 : i32
    %313 = arith.extui %312 : i1 to i32
    %c0_i32_122 = arith.constant 0 : i32
    %314 = arith.cmpi ne, %313, %c0_i32_122 : i32
    scf.if %314 {
      %c0_123 = arith.constant 0 : index
      %c0_124 = arith.constant 0 : index
      %c0_125 = arith.constant 0 : index
      %315 = vector.load %arg22[%c0_123, %c0_124, %c0_125] : memref<1x8x32xf32, #tpu.memory_space<vmem>>, vector<1x8x32xf32>
      %316 = vector.shape_cast %315 : vector<1x8x32xf32> to vector<8x32xf32>
      %317 = vector.shape_cast %310 : vector<8x32xf32> to vector<1x8x32xf32>
      tpu.vector_store %arg22[%c0_123, %c0_124, %c0_125], %317 {strides = array<i32>} : memref<1x8x32xf32, #tpu.memory_space<vmem>>, vector<1x8x32xf32>,
    } else {
    }
    return
  }
  func.func @transform_0(%arg0: i32, %arg1: i32) -> (i32, i32, i32) {
    %c0_i32 = arith.constant 0 : i32
    %c0_i32_0 = arith.constant 0 : i32
    %c0_i32_1 = arith.constant 0 : i32
    return %arg1, %c0_i32, %c0_i32_0 : i32, i32, i32
  }
  func.func @transform_1(%arg0: i32, %arg1: i32) -> (i32, i32, i32) {
    %c0_i32 = arith.constant 0 : i32
    %c0_i32_0 = arith.constant 0 : i32
    %c0_i32_1 = arith.constant 0 : i32
    return %arg0, %c0_i32, %c0_i32_0 : i32, i32, i32
  }
  func.func @transform_2(%arg0: i32, %arg1: i32) -> (i32, i32, i32) {
    %c0_i32 = arith.constant 0 : i32
    %c0_i32_0 = arith.constant 0 : i32
    %c0_i32_1 = arith.constant 0 : i32
    return %arg0, %c0_i32, %c0_i32_0 : i32, i32, i32
  }
  func.func @transform_3(%arg0: i32, %arg1: i32) -> (i32, i32) {
    %c0_i32 = arith.constant 0 : i32
    %c0_i32_0 = arith.constant 0 : i32
    %c0_i32_1 = arith.constant 0 : i32
    return %c0_i32, %c0_i32_0 : i32, i32
  }
  func.func @transform_4(%arg0: i32, %arg1: i32) -> (i32, i32) {
    %c0_i32 = arith.constant 0 : i32
    %c0_i32_0 = arith.constant 0 : i32
    %c0_i32_1 = arith.constant 0 : i32
    return %c0_i32, %c0_i32_0 : i32, i32
  }
  func.func @transform_5(%arg0: i32, %arg1: i32) -> (i32, i32, i32) {
    %c0_i32 = arith.constant 0 : i32
    %c0_i32_0 = arith.constant 0 : i32
    %c0_i32_1 = arith.constant 0 : i32
    return %arg1, %c0_i32, %c0_i32_0 : i32, i32, i32
  }
  func.func @transform_6(%arg0: i32, %arg1: i32) -> (i32, i32, i32) {
    %c0_i32 = arith.constant 0 : i32
    %c0_i32_0 = arith.constant 0 : i32
    %c0_i32_1 = arith.constant 0 : i32
    return %arg1, %c0_i32, %c0_i32_0 : i32, i32, i32
  }
  func.func @transform_7(%arg0: i32, %arg1: i32) -> (i32, i32, i32) {
    %c0_i32 = arith.constant 0 : i32
    %c0_i32_0 = arith.constant 0 : i32
    %c0_i32_1 = arith.constant 0 : i32
    return %arg1, %c0_i32, %c0_i32_0 : i32, i32, i32
  }
  func.func @transform_8(%arg0: i32, %arg1: i32) -> (i32, i32, i32) {
    %c0_i32 = arith.constant 0 : i32
    %c0_i32_0 = arith.constant 0 : i32
    %c0_i32_1 = arith.constant 0 : i32
    return %arg1, %c0_i32, %c0_i32_0 : i32, i32, i32
  }
  func.func @transform_9(%arg0: i32, %arg1: i32) -> (i32, i32, i32) {
    %c0_i32 = arith.constant 0 : i32
    %c0_i32_0 = arith.constant 0 : i32
    %c0_i32_1 = arith.constant 0 : i32
    return %arg1, %c0_i32, %c0_i32_0 : i32, i32, i32
  }
  func.func @transform_10(%arg0: i32, %arg1: i32) -> (i32, i32, i32) {
    %c0_i32 = arith.constant 0 : i32
    %c0_i32_0 = arith.constant 0 : i32
    %c0_i32_1 = arith.constant 0 : i32
    return %arg1, %c0_i32, %c0_i32_0 : i32, i32, i32
  }
  func.func @transform_11(%arg0: i32, %arg1: i32) -> (i32, i32, i32) {
    %c0_i32 = arith.constant 0 : i32
    %c0_i32_0 = arith.constant 0 : i32
    %c0_i32_1 = arith.constant 0 : i32
    return %arg1, %c0_i32, %c0_i32_0 : i32, i32, i32
  }
  func.func @transform_12(%arg0: i32, %arg1: i32) -> (i32, i32, i32) {
    %c0_i32 = arith.constant 0 : i32
    %c0_i32_0 = arith.constant 0 : i32
    %c0_i32_1 = arith.constant 0 : i32
    return %arg1, %c0_i32, %c0_i32_0 : i32, i32, i32
  }
  func.func @transform_13(%arg0: i32, %arg1: i32) -> (i32, i32, i32) {
    %c0_i32 = arith.constant 0 : i32
    %c0_i32_0 = arith.constant 0 : i32
    %c0_i32_1 = arith.constant 0 : i32
    return %arg1, %c0_i32, %c0_i32_0 : i32, i32, i32
  }
  func.func @transform_14(%arg0: i32, %arg1: i32) -> (i32, i32, i32) {
    %c0_i32 = arith.constant 0 : i32
    %c0_i32_0 = arith.constant 0 : i32
    %c0_i32_1 = arith.constant 0 : i32
    return %arg1, %c0_i32, %c0_i32_0 : i32, i32, i32
  }
  func.func @transform_15(%arg0: i32, %arg1: i32) -> (i32, i32, i32) {
    %c0_i32 = arith.constant 0 : i32
    %c0_i32_0 = arith.constant 0 : i32
    %c0_i32_1 = arith.constant 0 : i32
    return %arg1, %c0_i32, %c0_i32_0 : i32, i32, i32
  }
  func.func @transform_16(%arg0: i32, %arg1: i32) -> (i32, i32, i32) {
    %c0_i32 = arith.constant 0 : i32
    %c0_i32_0 = arith.constant 0 : i32
    %c0_i32_1 = arith.constant 0 : i32
    return %arg1, %c0_i32, %c0_i32_0 : i32, i32, i32
  }
  func.func @transform_17(%arg0: i32, %arg1: i32) -> (i32, i32, i32) {
    %c0_i32 = arith.constant 0 : i32
    %c0_i32_0 = arith.constant 0 : i32
    %c0_i32_1 = arith.constant 0 : i32
    return %arg1, %c0_i32, %c0_i32_0 : i32, i32, i32
  }
  func.func @transform_18(%arg0: i32, %arg1: i32) -> (i32, i32, i32) {
    %c0_i32 = arith.constant 0 : i32
    %c0_i32_0 = arith.constant 0 : i32
    %c0_i32_1 = arith.constant 0 : i32
    return %arg1, %c0_i32, %c0_i32_0 : i32, i32, i32
  }
  func.func @transform_19(%arg0: i32, %arg1: i32) -> (i32, i32, i32) {
    %c0_i32 = arith.constant 0 : i32
    %c0_i32_0 = arith.constant 0 : i32
    %c0_i32_1 = arith.constant 0 : i32
    return %arg1, %c0_i32, %c0_i32_0 : i32, i32, i32
  }
  func.func @transform_20(%arg0: i32, %arg1: i32) -> (i32, i32, i32) {
    %c0_i32 = arith.constant 0 : i32
    %c0_i32_0 = arith.constant 0 : i32
    %c0_i32_1 = arith.constant 0 : i32
    return %arg0, %c0_i32, %c0_i32_0 : i32, i32, i32
  }
}

</mosaic_0001>

<bundles_post_ra>
// kernel: decoder_forward.1
= control target key start
LH: loop header
LB: loop body
LE: loop exit
PB: predicated region body
PF: predicated region fallthrough
CT: control target
= control target key end

     0   :  { %s3927_s0 = inlined_call_operand.vmem [shape: f32[2,1,1], index: 0, kind: input, shape index: {}]   ;;  %s3928_s1 = inlined_call_operand.vmem [shape: f32[2,8,32], index: 1, kind: input, shape index: {}]   ;;  %s3929_s2 = inlined_call_operand.vmem [shape: bf16[2,8,32], index: 2, kind: input, shape index: {}]   ;;  %s3930_s3 = inlined_call_operand.vmem [shape: f32[1,32], index: 3, kind: input, shape index: {}]   ;;  %s3931_s4 = inlined_call_operand.vmem [shape: f32[1,32], index: 4, kind: input, shape index: {}]   ;;  %s3932_s5 = inlined_call_operand.vmem [shape: bf16[2,32,96], index: 5, kind: input, shape index: {}]   ;;  %s3933_s6 = inlined_call_operand.vmem [shape: bf16[2,32,32], index: 6, kind: input, shape index: {}]   ;;  %s3934_s7 = inlined_call_operand.vmem [shape: f32[2,1,32], index: 7, kind: input, shape index: {}]   ;;  %s3935_s8 = inlined_call_operand.vmem [shape: f32[2,1,32], index: 8, kind: input, shape index: {}]   ;;  %s3936_s9 = inlined_call_operand.vmem [shape: bf16[2,32,32], index: 9, kind: input, shape index: {}]   ;;  %s3937_s10 = inlined_call_operand.vmem [shape: bf16[2,32,64], index: 10, kind: input, shape index: {}]   ;;  %s3938_s11 = inlined_call_operand.vmem [shape: bf16[2,32,32], index: 11, kind: input, shape index: {}]   ;;  %s3939_s12 = inlined_call_operand.vmem [shape: f32[2,1,32], index: 12, kind: input, shape index: {}]   ;;  %s3940_s13 = inlined_call_operand.vmem [shape: f32[2,1,32], index: 13, kind: input, shape index: {}]   ;;  %s3941_s14 = inlined_call_operand.vmem [shape: bf16[2,32,64], index: 14, kind: input, shape index: {}]   ;;  %s3942_s15 = inlined_call_operand.vmem [shape: f32[2,1,64], index: 15, kind: input, shape index: {}]   ;;  %s3943_s16 = inlined_call_operand.vmem [shape: bf16[2,64,32], index: 16, kind: input, shape index: {}]   ;;  %s3944_s17 = inlined_call_operand.vmem [shape: f32[2,1,32], index: 17, kind: input, shape index: {}]   ;;  %s3945_s18 = inlined_call_operand.vmem [shape: f32[2,1,32], index: 18, kind: input, shape index: {}]   ;;  %s3946_s19 = inlined_call_operand.vmem [shape: f32[2,1,32], index: 19, kind: input, shape index: {}]   ;;  %s3947_s20 = inlined_call_operand.hbm [shape: f32[2,8,32], index: 20, kind: output, shape index: {}]  }
   0x1   :  { %3964 = sst [smem:[#allocation20_spill]] %s3927_s0 }
   0x2   :  { %3965 = sst [smem:[#allocation21_spill]] %s3928_s1 }
   0x3   :  { %3966 = sst [smem:[#allocation22_spill]] %s3929_s2 }
   0x4   :  { %3967 = sst [smem:[#allocation23_spill]] %s3930_s3 }
   0x5   :  { %3968 = sst [smem:[#allocation24_spill]] %s3931_s4 }
   0x6   :  { %3969 = sst [smem:[#allocation25_spill]] %s3932_s5 }
   0x7   :  { %3970 = sst [smem:[#allocation26_spill]] %s3933_s6 }
   0x8   :  { %3971 = sst [smem:[#allocation27_spill]] %s3935_s8 }
   0x9   :  { %3972 = sst [smem:[#allocation28_spill]] %s3936_s9 }
   0xa   :  { %3973 = sst [smem:[#allocation29_spill]] %s3937_s10 }
   0xb   :  { %3974 = sst [smem:[#allocation30_spill]] %s3938_s11 }
   0xc   :  { %3975 = sst [smem:[#allocation31_spill]] %s3939_s12 }
   0xd   :  { %3976 = sst [smem:[#allocation32_spill]] %s3940_s13 }
   0xe   :  { %3977 = sst [smem:[#allocation33_spill]] %s3941_s14 }
   0xf   :  { %3978 = sst [smem:[#allocation34_spill]] %s3943_s16 }
  0x10   :  { %3979 = sst [smem:[#allocation35_spill]] %s3944_s17 }
  0x11   :  { %3980 = sst [smem:[#allocation36_spill]] %s3945_s18 }
  0x12   :  { %3981 = sst [smem:[#allocation37_spill]] %s3946_s19 }
  0x13   :  { %3982 = sst [smem:[#allocation38_spill]] %s3947_s20 }
  0x14   :  { %25 = vsyncpa [#allocation4], 0 }
  0x15   :  { %27 = vsyncpa [#allocation4 + $0x1], 0  ;;  %s3416_s1 = smov 0   ;;  %s3418_s22 = smov 0  }
  0x16   :  { %s3420_s23 = smov 0   ;;  %s3422_s24 = smov 0  }
  0x17   :  { %s3424_s2 = smov 0   ;;  %s3426_s25 = smov 0  }
  0x18   :  { %s3428_s3 = smov 0   ;;  %s3430_s26 = smov 0  }
  0x19 LB: > { %3983 = sst [smem:[#allocation6_spill]] %s3262_s1  ;;  %s2753_s27 = sadd.s32 4294967295, %s3290_s26   ;;  %s3290_s26 = sphi %s3430_s26, %s33_s26   ;;  %s3286_s3 = sphi %s3428_s3, %s4046_s3   ;;  %s3282_s25 = sphi %s3426_s25, %s4045_s25   ;;  %s3278_s2 = sphi %s3424_s2, %s4044_s2   ;;  %s3274_s24 = sphi %s3422_s24, %s4043_s24   ;;  %s3270_s23 = sphi %s3420_s23, %s4042_s23   ;;  %s3266_s22 = sphi %s3418_s22, %s4041_s22   ;;  %s3262_s1 = sphi %s3416_s1, %s4040_s1  }
  0x1a   : > { %3984 = sst [smem:[#allocation7_spill]] %s3266_s22  ;;  %s2754_s28 = sadd.s32 4294967294, %s3290_s26  }
  0x1b   : > { %3985 = sst [smem:[#allocation8_spill]] %s3270_s23  ;;  %s42_s4 = sadd.s32 1, %s3282_s25 }
  0x1c   : > { %3986 = sst [smem:[#allocation9_spill]] %s3274_s24  ;;  %p43_p0 = scmp.ge.s32.totalorder %s42_s4, 2 }
  0x1d   : > { %3987 = sst [smem:[#allocation10_spill]] %s3278_s2  ;;  %s45_s29 = sadd.s32 1, %s3286_s3 }
  0x1e   : > { %3988 = sst [smem:[#allocation11_spill]] %s3282_s25  ;;  %p572_p1 = scmp.ne.s32.totalorder %s3270_s23, %s3266_s22 }
  0x1f   : > { %3989 = sst [smem:[#allocation12_spill]] %s3286_s3  ;;  %p573_p2 = scmp.eq.s32.totalorder %s2753_s27, 3 }
  0x20   : > { %3990 = sst [smem:[#allocation13_spill]] %s3290_s26  ;;  %s4048_s4 = smov (%p43_p0, %s42_s4), 0 }
  0x21   : > { %3991 = sst [smem:[#allocation14_spill]] %s4048_s4  ;;  %s4050_s29 = smov (!%p43_p0, %s45_s29), %s3286_s3 }
  0x22   : > { %p3465_p3 = por %p573_p2, %p572_p1  ;;  %p578_p4 = scmp.ne.s32.totalorder %s3266_s22, %s3262_s1 }
  0x23   : > { %p47_p5 = scmp.ge.s32.totalorder %s4050_s29, 2  ;;  %p579_p6 = scmp.eq.s32.totalorder %s2754_s28, 3 }
  0x24   : > { %s3992_s30 = scalar_select %p3465_p3, 1, 0 }
  0x25   : > { %p2757_p7 = scmp.ge.s32.totalorder %s3290_s26, 1  ;;  %p727_p8 = scmp.lt.s32.totalorder %s3290_s26, 5 }
  0x26   : > { %3993 = sst [smem:[#allocation15_spill]] %s3992_s30  ;;  %s4052_s29 = smov (%p47_p5, %s4050_s29), 0 }
  0x27   : > { %3994 = sst [smem:[#allocation16_spill]] %s4052_s29  ;;  %p3475_p9 = por %p579_p6, %p578_p4 }
  0x28   : > { %p728_p10 = pnand %p2757_p7, %p727_p8  ;;  %s559_s21 = ssub.s32 %s3286_s3, %s4052_s29 }
  0x29   : > { %s3995_s0 = scalar_select %p3475_p9, 1, 0 }
  0x2a   : > { %s562_s27 = sadd.s32 1, %s3270_s23  ;;  %p560_p11 = scmp.eq.s32.totalorder %s559_s21, 0 }
  0x2b   : > { %3996 = sst [smem:[#allocation17_spill]] %s3995_s0  ;;  %731 = sbr.rel (%p728_p10) target bundleno = 4713 (0x1269), region = 100 }
  0x2c   : > { %s3483_s4 = scalar_select %p560_p11, %s3270_s23, %s562_s27  }
  0x2e   : > { %3997 = sst [smem:[#allocation18_spill]] %s3483_s4 }
  0x32   : > { %s3954_s28 = sand.u32 1, %s3266_s22   ;;  %p850_p12 = scmp.lt.s32.totalorder %s3274_s24, 1 }
  0x33   : > { %s3489_s25 = sshll.u32 %s3954_s28, 3  ;;  %p853_p13 = scmp.lt.s32.totalorder %s3278_s2, 1 }
  0x34   : > { %s3493_s0 = scalar_select %p850_p12, %s3274_s24, 1 }
  0x35   : > { %s854_s21 = scalar_select %p853_p13, %s3278_s2, 1 }
  0x36   : > { %s2831_s23 = sshll.u32 %s3493_s0, 4  ;;  %s3999_s30 = sld [smem:[#allocation21_spill]] }
  0x37   : > { %s2759_s1 = sshll.u32 %s854_s21, 3  ;;  %s2760_s28 = sshll.u32 %s854_s21, 2 }
  0x38   : > { %s4000_s18 = sld [smem:[#allocation22_spill]]  ;;  %s4001_s5 = sld [smem:[#allocation25_spill]] }
  0x39   : > { %s4002_s6 = sld [smem:[#allocation26_spill]]  ;;  %s4004_s9 = sld [smem:[#allocation28_spill]] }
  0x3a   : > { %s4005_s10 = sld [smem:[#allocation29_spill]]  ;;  %s4006_s11 = sld [smem:[#allocation30_spill]] }
  0x3b   : > { %s4010_s14 = sld [smem:[#allocation33_spill]]  ;;  %s4012_s19 = sld [smem:[#allocation35_spill]] }
  0x3c   : > { %s856_s22 = scalar_lea.vmem %s3999_s30, %s2759_s1  ;;  %s4013_s13 = sld [smem:[#allocation36_spill]] }
  0x3d   : > { %s849_s4 = scalar_lea.vmem [#allocation3], %s3489_s25  ;;  %s4015_s2 = sld [smem:[#allocation9_spill]] }
  0x3e   : > { %s3507_s17 = scalar_lea.vmem %s4000_s18, %s2760_s28  ;;  %s3512_s3 = scalar_lea.vmem %s4001_s5, %s2831_s23 }
  0x3f   : > { %s3517_s21 = scalar_lea.vmem %s4002_s6, %s2831_s23  ;;  %s3530_s16 = scalar_lea.vmem %s4004_s9, %s2831_s23 }
  0x40   : > { %s3535_s29 = scalar_lea.vmem %s4005_s10, %s2831_s23  ;;  %s3540_s6 = scalar_lea.vmem %s4006_s11, %s2831_s23 }
  0x41   : > { %4007 = sst [smem:[#allocation19_spill]] %s3540_s6  ;;  %s3553_s9 = scalar_lea.vmem %s4010_s14, %s2831_s23 }
  0x42   : > { %s905_s10 = scalar_lea.vmem %s3942_s15, %s3493_s0  ;;  %s2837_s5 = sshll.u32 %s3493_s0, 5 }
  0x43   : > { %s4011_s6 = sld [smem:[#allocation34_spill]]  ;;  %s913_s18 = scalar_lea.vmem %s4012_s19, %s3493_s0 }
  0x44   : > { %s916_s26 = scalar_lea.vmem %s4013_s13, %s3493_s0  ;;  %s4014_s14 = sld [smem:[#allocation37_spill]] }
  0x45   : > { %p2775_p0 = scmp.ne.s32.totalorder %s4015_s2, 0 }
  0x46   : > { %v925_v0 = vld [vmem:[%s856_s22] sm:$0xff] (!%p2775_p0)  ;;  %vm928_vm0 = vcmask (!%p2775_p0), 261120   ;;  %s4016_s13 = sld [smem:[#allocation23_spill]] (!%p2775_p0)  ;;  %s4017_s19 = sld [smem:[#allocation24_spill]] (!%p2775_p0) }
  0x47   : > { %924 = sbr.rel (%p2775_p0) target bundleno = 385 (0x181), region = 104  ;;  %v929_v1 = vsel (!%p2775_p0), %vm928_vm0, %v925_v0, 0.0 }
  0x48   : > { %930 = vadd.xlane.f32.xlu0 (!%p2775_p0), %v929_v1 }
  0x49   : > { %s3563_s8 = scalar_lea.vmem %s4011_s6, %s2837_s5 }
  0x4a   : > { %s919_s12 = scalar_lea.vmem %s4014_s14, %s3493_s0 }
  0x4c   : > { %v2776_v11 = vld [vmem:[%s4016_s13] ss:$0 sm:$0xff] (!%p2775_p0) }
  0x4d   : > { %v2777_v13 = vld [vmem:[%s4017_s19] ss:$0 sm:$0xff] (!%p2775_p0) }
  0xd5   : > { %v931_v2 = vpop.xlane.xlu0 %930 }
  0xd6   : > { %v933_v3 = vmul.f32 0.03125, %v931_v2 }
  0xd8   : > { %v934_v4 = vsub.f32 %v925_v0, %v933_v3 }
  0xda   : > { %v935_v5 = vmul.f32 %v934_v4, %v934_v4 }
  0xdc   : > { %v936_v6 = vsel %vm928_vm0, %v935_v5, 0.0 }
  0xdd   : > { %937 = vadd.xlane.f32.xlu0 %v936_v6 }
 0x16a   : > { %v938_v7 = vpop.xlane.xlu0 %937 }
 0x16b   : > { %v939_v8 = vmul.f32 0.03125, %v938_v7 }
 0x16d   : > { %v940_v9 = vadd.f32 1e-06, %v939_v8 }
 0x16f   : > { %3138 = vrsqrt.f32 %v940_v9 }
 0x179   : > { %v3139_v10 = vpop.eup %3138 }
 0x17a   : > { %v942_v12 = vmul.f32 %v3139_v10, %v934_v4 }
 0x17c   : > { %v949_v14 = vmul.f32 %v2776_v11, %v942_v12 }
 0x17e   : > { %v956_v15 = vadd.f32 %v2777_v13, %v949_v14 }
 0x180   : > { %957 = vst.msk [vmem:[#allocation2] sm:$0xff] %vm928_vm0, %v956_v15 }
 0x181 PF: > { %v3142_v16 = vld [vmem:[%s3512_s3] sm:$0xff]   ;;  %v3292_v17 = vmov 0.0   ;;  %v3143_v18 = vld [vmem:[%s3512_s3 + $0x8] sm:$0xff]   ;;  %vm3293_vm1 = vmmov 0   ;;  %vm993_vm2 = vcmask 261120   ;;  %s3294_s3 = smov 120   ;;  %v959_v39 = vlaneseq }
 0x182   : > { %2893 = vmatprep.subr.bf16.mxu1 %v3292_v17  ;;  %2907 = vmatprep.subr.bf16.mxu0 %v3292_v17  ;;  %s3295_s30 = smov 96   ;;  %s3296_s5 = smov 80   ;;  %v3302_v27 = vmov 0   ;;  %vm1069_vm3 = vcmask 64512   ;;  %vm1135_vm6 = vcmask 1043456   ;;  %vm1525_vm7 = vcmask 130048  }
 0x183   : > { %2894 = vmatpush3.bf16.msra.mxu1 %v3142_v16  ;;  %2897 = vmatprep.mubr.msk.bf16.mxu1 %vm3293_vm1, %v3292_v17  ;;  %s3297_s27 = smov 88   ;;  %s3298_s20 = smov 72   ;;  %v962_v40 = vand.u32 127, %v959_v39  ;;  %v3643_v41 = vshrl.u32 %v959_v39, 7  ;;  %vm1527_vm8 = vcmask 195584   ;;  %vm2412_vm9 = vcmask 523264  }
 0x184   : > { %2895 = vmatprep.subr.bf16.mxu1 %v3292_v17  ;;  %2909 = vmatprep.mubr.msk.bf16.mxu0 %vm3293_vm1, %v3292_v17  ;;  %s3299_s1 = smov 112   ;;  %s3300_s24 = smov 104  }
 0x185   : > { %s3301_s23 = smov 64   ;;  %s4018_s6 = sld [smem:[#allocation20_spill]]  ;;  %3140 = vset.pattern.permute.xlu1 %v3302_v27  ;;  %3141 = vset.pattern.permute.xlu0 %v3302_v27  ;;  %v964_v42 = vsub.s32 %v3643_v41, %v962_v40  ;;  %vm1048_vm4 = vcmp.ge.s32.totalorder %v3643_v41, 1  ;;  %vm1056_vm5 = vcmp.lt.s32.totalorder %v3643_v41, 7 }
 0x186   : > { %s3303_s13 = smov 56   ;;  %s3304_s14 = smov 40  }
 0x187   : > { %v3594_v19 = vld [vmem:[#allocation2] sm:$0xff]  ;;  %2896 = vmatpush3.bf16.msra.mxu1 %v3143_v18  ;;  %v965_v43 = vcvt.s32.f32 %v964_v42  ;;  %s3305_s22 = smov 48   ;;  %s3306_s19 = smov 8  }
 0x188   : > { %v976_v20 = vpack.c.bf16 %v3594_v19, %v3594_v19  ;;  %2901 = vmatprep.subr.bf16.mxu1 %v3292_v17  ;;  %s3308_s28 = smov 24  }
 0x18a   : > { %2898 = vmatmul.mubr.msk.bf16.vlgmr.msra.gmra.mrb[0].mxu1 %vm993_vm2, %v976_v20 }
 0x18b   : > { %2903 = vmatprep.mubr.msk.bf16.mxu1 %vm3293_vm1, %v3292_v17  ;;  %s4019_s11 = scalar_lea.vmem %s4018_s6, %s3493_s0  ;;  %s4031_s6 = sld [smem:[#allocation9_spill]] }
 0x18c   : > { %v2778_v26 = vld [vmem:[%s4019_s11] ss:$0 sm:$0xff]  ;;  %s4021_s11 = sld [smem:[#allocation27_spill]] }
 0x191   : > { %p2826_p1 = scmp.ne.s32.totalorder %s4031_s6, 1 }
 0x25d   : > { %v3605_v21 = vpop.f32.mrb[0].mxu1 }
 0x25e   : > { %v1065_v22 = vpack.c.bf16 %v3605_v21, %v3605_v21  ;;  %v2899_v23 = vpop.f32.mrb[1].mxu1 }
 0x25f   : > { %v1034_v24 = vpop.f32.mrb[2].mxu1 }
 0x260   : > { %1179 = vrot.lane.b32.xlu1 %v1065_v22, %s3294_s3  ;;  %1067 = vrot.lane.b32.xlu0 %v1065_v22, %s3295_s30  ;;  %v2900_v25 = vpop.f32.mrb[3].mxu1 }
 0x264   : > { %1292 = vrot.lane.b32.xlu1 %v1065_v22, %s3296_s5  ;;  %1181 = vrot.lane.b32.xlu0 %v1065_v22, %s3297_s27 }
 0x268   : > { %1403 = vrot.lane.b32.xlu1 %v1065_v22, %s3298_s20  ;;  %1290 = vrot.lane.b32.xlu0 %v1065_v22, %s3299_s1 }
 0x26c   : > { %1401 = vrot.lane.b32.xlu0 %v1065_v22, %s3300_s24  ;;  %972 = vperm.xlu1 %3140, %v2778_v26  }
 0x270   : > { %1044 = vrot.lane.b32.xlu0 %v3605_v21, %s3301_s23 }
 0x2d2   : > { %v1068_v28 = vpop.permute.xlu0 %1067  ;;  %v1180_v31 = vpop.permute.xlu1 %1179 }
 0x2d3   : > { %v1074_v29 = vsel %vm1069_vm3, %v1068_v28, 0 }
 0x2d4   : > { %2902 = vmatpush3.bf16.xpose.msra.mxu1 %v1074_v29 }
 0x2d5   : > { %2913 = vmatprep.subr.bf16.mxu1 %v3292_v17 }
 0x2d6   : > { %v1182_v30 = vpop.permute.xlu0 %1181  ;;  %v1293_v33 = vpop.permute.xlu1 %1292 }
 0x2d7   : > { %v1187_v32 = vsel %vm1069_vm3, %v1182_v30, 0  ;;  %v1298_v34 = vsel %vm1069_vm3, %v1293_v33, 0 }
 0x2da   : > { %v1404_v35 = vpop.permute.xlu1 %1403  ;;  %v1291_v36 = vpop.permute.xlu0 %1290 }
 0x2db   : > { %2904 = vmatmul.mubr.msk.bf16.vlgmr.msra.gmra.mrb[4].mxu1 %vm1069_vm3, %v1065_v22  ;;  %v1409_v37 = vsel %vm1069_vm3, %v1404_v35, 0 }
 0x2dc   : > { %2914 = vmatpush3.bf16.xpose.msra.mxu1 %v1187_v32  ;;  %2915 = vmatprep.mubr.msk.bf16.mxu1 %vm3293_vm1, %v3292_v17 }
 0x2dd   : > { %2925 = vmatprep.subr.bf16.mxu1 %v3292_v17 }
 0x2de   : > { %v1402_v38 = vpop.permute.xlu0 %1401 }
 0x2e2   : > { %v1045_v6 = vpop.permute.xlu0 %1044 }
 0x2e3   : > { %2916 = vmatmul.mubr.msk.bf16.vlgmr.msra.gmra.mrb[8].mxu1 %vm1069_vm3, %v1180_v31  ;;  %v1047_v7 = vrot.slane %v1045_v6, 7  ;;  %v1055_v8 = vrot.slane %v1045_v6, 1 }
 0x2e4   : > { %2926 = vmatpush3.bf16.xpose.msra.mxu1 %v1298_v34  ;;  %2927 = vmatprep.mubr.msk.bf16.mxu1 %vm3293_vm1, %v3292_v17 }
 0x2e5   : > { %2937 = vmatprep.subr.bf16.mxu1 %v3292_v17  ;;  %v1049_v9 = vsel %vm1048_vm4, %v1047_v7, 0.0  ;;  %v1057_v10 = vsel %vm1056_vm5, %v1055_v8, 0.0 }
 0x2eb   : > { %2928 = vmatmul.mubr.msk.bf16.vlgmr.msra.gmra.mrb[12].mxu1 %vm1069_vm3, %v1291_v36  ;;  %v973_v44 = vpop.permute.xlu1 %972 }
 0x2ec   : > { %2938 = vmatpush3.bf16.xpose.msra.mxu1 %v1409_v37  ;;  %2939 = vmatprep.mubr.msk.bf16.mxu1 %vm3293_vm1, %v3292_v17  ;;  %v3646_v45 = vmul.f32 %v973_v44, %v965_v43 }
 0x2ed   : > { %2949 = vmatprep.subr.bf16.mxu1 %v3292_v17 }
 0x2f3   : > { %2940 = vmatmul.mubr.msk.bf16.vlgmr.msra.gmra.mrb[16].mxu1 %vm1069_vm3, %v1402_v38 }
 0x2f4   : > { %2953 = vmatprep.mubr.msk.bf16.mxu1 %vm3293_vm1, %v3292_v17 }
 0x3ae   : > { %v1110_v46 = vpop.f32.mrb[4].mxu1 }
 0x3af   : > { %v1116_v47 = vmul.f32 %v1110_v46, %v3646_v45  ;;  %v2905_v48 = vpop.f32.mrb[5].mxu1 }
 0x3b0   : > { %v1113_v49 = vpop.f32.mrb[6].mxu1 }
 0x3b1   : > { %v2906_v50 = vpop.f32.mrb[7].mxu1  ;;  %v1117_v51 = vsel %vm1069_vm3, %v1116_v47, -inf }
 0x3b2   : > { %1118 = vmax.xlane.f32.xlu1 %v1117_v51 }
 0x3b6   : > { %v1223_v52 = vpop.f32.mrb[8].mxu1 }
 0x3b7   : > { %v1229_v53 = vmul.f32 %v1223_v52, %v3646_v45  ;;  %v2917_v54 = vpop.f32.mrb[9].mxu1 }
 0x3b8   : > { %v1226_v55 = vpop.f32.mrb[10].mxu1 }
 0x3b9   : > { %v2918_v56 = vpop.f32.mrb[11].mxu1  ;;  %v1230_v57 = vsel %vm1069_vm3, %v1229_v53, -inf }
 0x3ba   : > { %1231 = vmax.xlane.f32.xlu0 %v1230_v57 }
 0x3be   : > { %v1334_v58 = vpop.f32.mrb[12].mxu1 }
 0x3bf   : > { %v1340_v59 = vmul.f32 %v1334_v58, %v3646_v45  ;;  %v2929_v60 = vpop.f32.mrb[13].mxu1 }
 0x3c0   : > { %v1337_v61 = vpop.f32.mrb[14].mxu1 }
 0x3c1   : > { %v2930_v62 = vpop.f32.mrb[15].mxu1  ;;  %v1341_v63 = vsel %vm1069_vm3, %v1340_v59, -inf }
 0x3c2   : > { %1342 = vmax.xlane.f32.xlu0 %v1341_v63 }
 0x3c6   : > { %v1445_v0 = vpop.f32.mrb[16].mxu1 }
 0x3c7   : > { %v1451_v1 = vmul.f32 %v1445_v0, %v3646_v45  ;;  %v2941_v2 = vpop.f32.mrb[17].mxu1 }
 0x3c8   : > { %v1448_v3 = vpop.f32.mrb[18].mxu1 }
 0x3c9   : > { %v2942_v4 = vpop.f32.mrb[19].mxu1  ;;  %v1452_v5 = vsel %vm1069_vm3, %v1451_v1, -inf }
 0x3ca   : > { %1453 = vmax.xlane.f32.xlu1 %v1452_v5 }
 0x3d8   : > { %1051 = vrot.lane.b32.xlu0 %v1049_v9, %s3301_s23  ;;  %v3144_v9 = vld [vmem:[%s3517_s21] sm:$0xff]  }
 0x3d9   : > { %2950 = vmatpush3.bf16.msra.mxu1 %v3144_v9 }
 0x3da   : > { %2951 = vmatprep.subr.bf16.mxu1 %v3292_v17 }
 0x3db   : > { %1059 = vrot.lane.b32.xlu1 %v1057_v10, %s3301_s23  ;;  %v3145_v10 = vld [vmem:[%s3517_s21 + $0x8] sm:$0xff]  }
 0x3dd   : > { %2952 = vmatpush3.bf16.msra.mxu1 %v3145_v10 }
 0x3de   : > { %2965 = vmatprep.subr.bf16.mxu1 %v3292_v17 }
 0x43f   : > { %v1119_v11 = vpop.xlane.xlu1 %1118 }
 0x440   : > { %v1120_v12 = vsub.f32 %v1116_v47, %v1119_v11 }
 0x442   : > { %v1121_v13 = vmul.f32 1.442695, %v1120_v12 }
 0x444   : > { %3158 = vpow2.f32 %v1121_v13 }
 0x447   : > { %v1232_v14 = vpop.xlane.xlu0 %1231 }
 0x448   : > { %v1233_v15 = vsub.f32 %v1229_v53, %v1232_v14 }
 0x44a   : > { %v1234_v16 = vmul.f32 1.442695, %v1233_v15 }
 0x44c   : > { %3160 = vpow2.f32 %v1234_v16 }
 0x44e   : > { %v3159_v18 = vpop.eup %3158 }
 0x44f   : > { %v1343_v20 = vpop.xlane.xlu0 %1342  ;;  %v1123_v22 = vsel %vm1069_vm3, %v3159_v18, 0.0 }
 0x450   : > { %v1344_v23 = vsub.f32 %v1340_v59, %v1343_v20  ;;  %1124 = vadd.xlane.f32.xlu1 %v1123_v22 }
 0x452   : > { %v1345_v24 = vmul.f32 1.442695, %v1344_v23 }
 0x453   : > { %v1052_v26 = vpop.permute.xlu0 %1051 }
 0x454   : > { %3162 = vpow2.f32 %v1345_v24  ;;  %v1054_v29 = vadd.f32 %v1052_v26, %v3605_v21 }
 0x456   : > { %v3161_v25 = vpop.eup %3160 }
 0x457   : > { %v1454_v27 = vpop.xlane.xlu1 %1453  ;;  %v1236_v28 = vsel %vm1069_vm3, %v3161_v25, 0.0 }
 0x458   : > { %1237 = vadd.xlane.f32.xlu0 %v1236_v28  ;;  %v1455_v36 = vsub.f32 %v1451_v1, %v1454_v27 }
 0x45a   : > { %v1456_v37 = vmul.f32 1.442695, %v1455_v36  ;;  %v3147_v36 = vld [vmem:[%s3535_s29 + $0x8] sm:$0xff]  }
 0x45b   : > { %v1060_v30 = vpop.permute.xlu1 %1059 }
 0x45c   : > { %v1062_v31 = vadd.f32 %v1060_v30, %v1054_v29  ;;  %3164 = vpow2.f32 %v1456_v37 }
 0x45e   : > { %v3163_v32 = vpop.eup %3162  ;;  %v1063_v33 = vmul.f32 0.33333334, %v1062_v31 }
 0x45f   : > { %v1347_v34 = vsel %vm1069_vm3, %v3163_v32, 0.0 }
 0x460   : > { %v1064_v35 = vpack.c.bf16 %v1063_v33, %v1063_v33  ;;  %1348 = vadd.xlane.f32.xlu0 %v1347_v34 }
 0x462   : > { %1242 = vrot.lane.b32.xlu1 %v1064_v35, %s3303_s13  ;;  %s4022_s13 = scalar_lea.vmem %s4021_s11, %s3493_s0 }
 0x466   : > { %v3165_v38 = vpop.eup %3164 }
 0x467   : > { %v1458_v21 = vsel %vm1069_vm3, %v3165_v38, 0.0 }
 0x476   : > { %1130 = vrot.lane.b32.xlu0 %v1064_v35, %s3301_s23  ;;  %s3307_s23 = smov 16  }
 0x47a   : > { %1464 = vrot.lane.b32.xlu0 %v1064_v35, %s3304_s14 }
 0x486   : > { %1459 = vadd.xlane.f32.xlu1 %v1458_v21 }
 0x497   : > { %1353 = vrot.lane.b32.xlu1 %v1064_v35, %s3305_s22  ;;  %v3146_v35 = vld [vmem:[%s3535_s29] sm:$0xff]   ;;  %s4020_s29 = scalar_lea.vmem %s3934_s7, %s3493_s0 }
 0x4dd   : > { %v1125_v39 = vpop.xlane.xlu1 %1124 }
 0x4de   : > { %3166 = vrcp.f32 %v1125_v39 }
 0x4e1   : > { %v1243_v48 = vpop.permute.xlu1 %1242 }
 0x4e2   : > { %v1248_v51 = vsel %vm1135_vm6, %v1243_v48, 0 }
 0x4e5   : > { %v1238_v40 = vpop.xlane.xlu0 %1237 }
 0x4e6   : > { %3168 = vrcp.f32 %v1238_v40  ;;  %v1614_v40 = vld [vmem:[%s3507_s17] sm:$0xf] }
 0x4e8   : > { %v3167_v42 = vpop.eup %3166 }
 0x4e9   : > { %v1127_v44 = vmul.f32 %v3167_v42, %v3159_v18  ;;  %v3148_v42 = vld [vmem:[%s3530_s16] sm:$0xff]  }
 0x4eb   : > { %v1128_v49 = vpack.c.bf16 %v1127_v44, %v1127_v44 }
 0x4ed   : > { %v1349_v43 = vpop.xlane.xlu0 %1348 }
 0x4ee   : > { %3170 = vrcp.f32 %v1349_v43  ;;  %v3149_v43 = vld [vmem:[%s3530_s16 + $0x8] sm:$0xff]   ;;  %s3309_s16 = smov 32  }
 0x4f0   : > { %v3169_v50 = vpop.eup %3168 }
 0x4f1   : > { %v1131_v46 = vpop.permute.xlu0 %1130  ;;  %v1240_v52 = vmul.f32 %v3169_v50, %v3161_v25 }
 0x4f2   : > { %v1137_v47 = vsel %vm1135_vm6, %v1131_v46, 0 }
 0x4f3   : > { %2908 = vmatpush3.bf16.msra.mxu0 %v1137_v47  ;;  %v1241_v53 = vpack.c.bf16 %v1240_v52, %v1240_v52 }
 0x4f4   : > { %2919 = vmatprep.subr.bf16.mxu0 %v3292_v17 }
 0x4f5   : > { %v1465_v59 = vpop.permute.xlu0 %1464 }
 0x4f6   : > { %2910 = vmatmul.mubr.msk.bf16.vlgmr.msra.gmra.mrb[0].mxu0 %vm1069_vm3, %v1128_v49  ;;  %v1470_v61 = vsel %vm1135_vm6, %v1465_v59, 0  ;;  %v2793_v49 = vld [vmem:[%s4020_s29] ss:$0 sm:$0xff] }
 0x4f7   : > { %2920 = vmatpush3.bf16.msra.mxu0 %v1248_v51  ;;  %2921 = vmatprep.mubr.msk.bf16.mxu0 %vm3293_vm1, %v3292_v17  ;;  %v2794_v51 = vld [vmem:[%s4022_s13] ss:$0 sm:$0xff] }
 0x4f8   : > { %2931 = vmatprep.subr.bf16.mxu0 %v3292_v17  ;;  %v3171_v54 = vpop.eup %3170 }
 0x4f9   : > { %v1351_v56 = vmul.f32 %v3171_v54, %v3163_v32 }
 0x4fb   : > { %v1352_v60 = vpack.c.bf16 %v1351_v56, %v1351_v56 }
 0x4fe   : > { %2922 = vmatmul.mubr.msk.bf16.vlgmr.msra.gmra.mrb[4].mxu0 %vm1069_vm3, %v1241_v53 }
 0x4ff   : > { %2933 = vmatprep.mubr.msk.bf16.mxu0 %vm3293_vm1, %v3292_v17 }
 0x513   : > { %v1460_v55 = vpop.xlane.xlu1 %1459 }
 0x514   : > { %3172 = vrcp.f32 %v1460_v55 }
 0x517   : > { %v1354_v57 = vpop.permute.xlu1 %1353 }
 0x518   : > { %v1359_v58 = vsel %vm1135_vm6, %v1354_v57, 0 }
 0x519   : > { %2932 = vmatpush3.bf16.msra.mxu0 %v1359_v58 }
 0x51a   : > { %2943 = vmatprep.subr.bf16.mxu0 %v3292_v17 }
 0x51c   : > { %2934 = vmatmul.mubr.msk.bf16.vlgmr.msra.gmra.mrb[8].mxu0 %vm1069_vm3, %v1352_v60 }
 0x51d   : > { %2944 = vmatpush3.bf16.msra.mxu0 %v1470_v61  ;;  %2945 = vmatprep.mubr.msk.bf16.mxu0 %vm3293_vm1, %v3292_v17 }
 0x51e   : > { %v3173_v62 = vpop.eup %3172  ;;  %2957 = vmatprep.subr.bf16.mxu0 %v3292_v17 }
 0x51f   : > { %v1462_v63 = vmul.f32 %v3173_v62, %v3165_v38 }
 0x521   : > { %v1463_v0 = vpack.c.bf16 %v1462_v63, %v1462_v63 }
 0x524   : > { %2946 = vmatmul.mubr.msk.bf16.vlgmr.msra.gmra.mrb[12].mxu0 %vm1069_vm3, %v1463_v0 }
 0x525   : > { %2961 = vmatprep.mubr.msk.bf16.mxu0 %vm3293_vm1, %v3292_v17  ;;  %2958 = vmatpush3.bf16.msra.mxu0 %v3148_v42 }
 0x526   : > { %2959 = vmatprep.subr.bf16.mxu0 %v3292_v17 }
 0x529   : > { %2960 = vmatpush3.bf16.msra.mxu0 %v3149_v43 }
 0x52a   : > { %2973 = vmatprep.subr.bf16.mxu0 %v3292_v17 }
 0x5c9   : > { %v1173_v1 = vpop.f32.mrb[0].mxu0 }
 0x5ca   : > { %v2911_v2 = vpop.f32.mrb[1].mxu0 }
 0x5cb   : > { %v1176_v3 = vpop.f32.mrb[2].mxu0 }
 0x5cc   : > { %v2912_v4 = vpop.f32.mrb[3].mxu0 }
 0x5d1   : > { %v1284_v5 = vpop.f32.mrb[4].mxu0 }
 0x5d2   : > { %1513 = vrot.lane.b32.xlu1 %v1284_v5, %s3306_s19  ;;  %v2923_v6 = vpop.f32.mrb[5].mxu0 }
 0x5d3   : > { %v1287_v7 = vpop.f32.mrb[6].mxu0 }
 0x5d4   : > { %v2924_v8 = vpop.f32.mrb[7].mxu0 }
 0x5ef   : > { %v1395_v11 = vpop.f32.mrb[8].mxu0 }
 0x5f0   : > { %1517 = vrot.lane.b32.xlu0 %v1395_v11, %s3307_s23  ;;  %v2935_v12 = vpop.f32.mrb[9].mxu0 }
 0x5f1   : > { %v1398_v13 = vpop.f32.mrb[10].mxu0 }
 0x5f2   : > { %v2936_v14 = vpop.f32.mrb[11].mxu0 }
 0x5f7   : > { %v1506_v15 = vpop.f32.mrb[12].mxu0 }
 0x5f8   : > { %1521 = vrot.lane.b32.xlu1 %v1506_v15, %s3308_s28  ;;  %v2947_v16 = vpop.f32.mrb[13].mxu0 }
 0x5f9   : > { %v1509_v18 = vpop.f32.mrb[14].mxu0 }
 0x5fa   : > { %v2948_v20 = vpop.f32.mrb[15].mxu0 }
 0x644   : > { %v1514_v22 = vpop.permute.xlu1 %1513 }
 0x645   : > { %v1524_v24 = vsel %vm1069_vm3, %v1173_v1, %v1514_v22 }
 0x662   : > { %v1518_v23 = vpop.permute.xlu0 %1517 }
 0x663   : > { %v1526_v25 = vsel %vm1525_vm7, %v1524_v24, %v1518_v23 }
 0x66a   : > { %v1522_v26 = vpop.permute.xlu1 %1521 }
 0x66b   : > { %v1528_v27 = vsel %vm1527_vm8, %v1526_v25, %v1522_v26 }
 0x66c   : > { %v1529_v28 = vpack.c.bf16 %v1528_v27, %v1528_v27 }
 0x66e   : > { %2954 = vmatmul.mubr.msk.bf16.vlgmr.msra.gmra.mrb[20].mxu1 %vm993_vm2, %v1529_v28 }
 0x66f   : > { %2969 = vmatprep.mubr.msk.bf16.mxu1 %vm3293_vm1, %v3292_v17  ;;  %2966 = vmatpush3.bf16.msra.mxu1 %v3146_v35 }
 0x670   : > { %2967 = vmatprep.subr.bf16.mxu1 %v3292_v17 }
 0x673   : > { %2968 = vmatpush3.bf16.msra.mxu1 %v3147_v36 }
 0x674   : > { %2979 = vmatprep.subr.bf16.mxu1 %v3292_v17 }
 0x676   : > { %2970 = vmatmul.mubr.msk.bf16.vlgmr.msra.gmra.mrb[24].mxu1 %vm993_vm2, %v1614_v40 }
 0x677   : > { %2981 = vmatprep.mubr.msk.bf16.mxu1 %vm3293_vm1, %v3292_v17 }
 0x741   : > { %v1579_v29 = vpop.f32.mrb[20].mxu1 }
 0x742   : > { %v1585_v30 = vadd.f32 %v1579_v29, %v3594_v19  ;;  %v2955_v31 = vpop.f32.mrb[21].mxu1 }
 0x743   : > { %v1582_v32 = vpop.f32.mrb[22].mxu1 }
 0x744   : > { %v2956_v33 = vpop.f32.mrb[23].mxu1  ;;  %v1586_v34 = vsel %vm993_vm2, %v1585_v30, 0.0 }
 0x745   : > { %1587 = vadd.xlane.f32.xlu0 %v1586_v34 }
 0x749   : > { %v3735_v55 = vpop.f32.mrb[24].mxu1 }
 0x74a   : > { %v1761_v56 = vpack.c.bf16 %v3735_v55, %v3735_v55  ;;  %v2971_v57 = vpop.f32.mrb[25].mxu1 }
 0x74b   : > { %v1731_v58 = vpop.f32.mrb[26].mxu1 }
 0x74c   : > { %v2972_v59 = vpop.f32.mrb[27].mxu1  ;;  %v1766_v60 = vsel %vm1069_vm3, %v1761_v56, 0 }
 0x75b   : > { %1874 = vrot.lane.b32.xlu0 %v1761_v56, %s3294_s3 }
 0x75f   : > { %1985 = vrot.lane.b32.xlu0 %v1761_v56, %s3299_s1 }
 0x763   : > { %2096 = vrot.lane.b32.xlu0 %v1761_v56, %s3300_s24 }
 0x767   : > { %1741 = vrot.lane.b32.xlu0 %v3735_v55, %s3295_s30 }
 0x7d2   : > { %v1588_v37 = vpop.xlane.xlu0 %1587 }
 0x7d3   : > { %v1590_v38 = vmul.f32 0.03125, %v1588_v37 }
 0x7d5   : > { %v1591_v19 = vsub.f32 %v1585_v30, %v1590_v38 }
 0x7d6   : > { %v1875_v62 = vpop.permute.xlu0 %1874 }
 0x7d7   : > { %v1592_v21 = vmul.f32 %v1591_v19, %v1591_v19  ;;  %v1880_v1 = vsel %vm1069_vm3, %v1875_v62, 0 }
 0x7d9   : > { %v1593_v39 = vsel %vm993_vm2, %v1592_v21, 0.0 }
 0x7da   : > { %1594 = vadd.xlane.f32.xlu1 %v1593_v39  ;;  %v1986_v4 = vpop.permute.xlu0 %1985 }
 0x7db   : > { %v1991_v6 = vsel %vm1069_vm3, %v1986_v4, 0 }
 0x7de   : > { %v2097_v7 = vpop.permute.xlu0 %2096 }
 0x7df   : > { %v2102_v9 = vsel %vm1069_vm3, %v2097_v7, 0 }
 0x7e2   : > { %v1742_v38 = vpop.permute.xlu0 %1741 }
 0x7e3   : > { %v1751_v21 = vrot.slane %v1742_v38, 1 }
 0x7e5   : > { %v1752_v40 = vsel %vm1056_vm5, %v1751_v21, 0.0 }
 0x867   : > { %v1595_v44 = vpop.xlane.xlu1 %1594 }
 0x868   : > { %v1596_v46 = vmul.f32 0.03125, %v1595_v44 }
 0x86a   : > { %v1597_v47 = vadd.f32 1e-06, %v1596_v46 }
 0x86c   : > { %3174 = vrsqrt.f32 %v1597_v47 }
 0x876   : > { %v3175_v48 = vpop.eup %3174 }
 0x877   : > { %v1599_v50 = vmul.f32 %v3175_v48, %v1591_v19  ;;  %v1744_v19 = vrot.slane %v1742_v38, 7 }
 0x879   : > { %v1606_v52 = vmul.f32 %v2793_v49, %v1599_v50  ;;  %v1745_v39 = vsel %vm1048_vm4, %v1744_v19, 0.0 }
 0x87b   : > { %v3728_v53 = vadd.f32 %v2794_v51, %v1606_v52 }
 0x87d   : > { %v1615_v54 = vpack.c.bf16 %v3728_v53, %v3728_v53 }
 0x87f   : > { %2962 = vmatmul.mubr.msk.bf16.vlgmr.msra.gmra.mrb[16].mxu0 %vm993_vm2, %v1615_v54 }
 0x880   : > { %2975 = vmatprep.mubr.msk.bf16.mxu0 %vm3293_vm1, %v3292_v17  ;;  %2974 = vmatpush3.bf16.xpose.msra.mxu0 %v1766_v60 }
 0x881   : > { %2985 = vmatprep.subr.bf16.mxu0 %v3292_v17 }
 0x952   : > { %v1669_v61 = vpop.f32.mrb[16].mxu0 }
 0x953   : > { %v1760_v63 = vpack.c.bf16 %v1669_v61, %v1669_v61  ;;  %v2963_v0 = vpop.f32.mrb[17].mxu0 }
 0x954   : > { %v1672_v2 = vpop.f32.mrb[18].mxu0 }
 0x955   : > { %1871 = vrot.lane.b32.xlu1 %v1760_v63, %s3294_s3  ;;  %v2964_v3 = vpop.f32.mrb[19].mxu0  ;;  %2976 = vmatmul.mubr.msk.bf16.vlgmr.msra.gmra.mrb[20].mxu0 %vm1069_vm3, %v1760_v63  ;;  %s4023_s3 = sld [smem:[#allocation19_spill]] }
 0x956   : > { %2986 = vmatpush3.bf16.xpose.msra.mxu0 %v1880_v1  ;;  %2987 = vmatprep.mubr.msk.bf16.mxu0 %vm3293_vm1, %v3292_v17 }
 0x957   : > { %2997 = vmatprep.subr.bf16.mxu0 %v3292_v17 }
 0x959   : > { %1983 = vrot.lane.b32.xlu1 %v1760_v63, %s3299_s1 }
 0x95b   : > { %v3150_v19 = vld [vmem:[%s4023_s3] sm:$0xff]   ;;  %v3151_v21 = vld [vmem:[%s4023_s3 + $0x8] sm:$0xff]  }
 0x95d   : > { %2094 = vrot.lane.b32.xlu1 %v1760_v63, %s3300_s24  ;;  %s4026_s24 = sld [smem:[#allocation32_spill]] }
 0x963   : > { %s4027_s14 = scalar_lea.vmem %s4026_s24, %s3493_s0 }
 0x9c7   : > { %v1872_v5 = vpop.permute.xlu1 %1871 }
 0x9c8   : > { %2988 = vmatmul.mubr.msk.bf16.vlgmr.msra.gmra.mrb[24].mxu0 %vm1069_vm3, %v1872_v5 }
 0x9c9   : > { %2998 = vmatpush3.bf16.xpose.msra.mxu0 %v1991_v6  ;;  %2999 = vmatprep.mubr.msk.bf16.mxu0 %vm3293_vm1, %v3292_v17 }
 0x9ca   : > { %3009 = vmatprep.subr.bf16.mxu0 %v3292_v17 }
 0x9cb   : > { %v1984_v8 = vpop.permute.xlu1 %1983 }
 0x9cf   : > { %v2095_v10 = vpop.permute.xlu1 %2094 }
 0x9d0   : > { %3000 = vmatmul.mubr.msk.bf16.vlgmr.msra.gmra.mrb[28].mxu0 %vm1069_vm3, %v1984_v8 }
 0x9d1   : > { %3010 = vmatpush3.bf16.xpose.msra.mxu0 %v2102_v9  ;;  %3011 = vmatprep.mubr.msk.bf16.mxu0 %vm3293_vm1, %v3292_v17 }
 0x9d2   : > { %3021 = vmatprep.subr.bf16.mxu0 %v3292_v17 }
 0x9d8   : > { %3012 = vmatmul.mubr.msk.bf16.vlgmr.msra.gmra.mrb[32].mxu0 %vm1069_vm3, %v2095_v10 }
 0x9d9   : > { %3025 = vmatprep.mubr.msk.bf16.mxu0 %vm3293_vm1, %v3292_v17  ;;  %3022 = vmatpush3.bf16.msra.mxu0 %v3150_v19 }
 0x9da   : > { %3023 = vmatprep.subr.bf16.mxu0 %v3292_v17 }
 0x9dd   : > { %3024 = vmatpush3.bf16.msra.mxu0 %v3151_v21 }
 0x9de   : > { %3037 = vmatprep.subr.bf16.mxu0 %v3292_v17 }
 0xa28   : > { %v1802_v11 = vpop.f32.mrb[20].mxu0 }
 0xa29   : > { %v1808_v12 = vmul.f32 %v1802_v11, %v3646_v45  ;;  %v2977_v13 = vpop.f32.mrb[21].mxu0 }
 0xa2a   : > { %v1805_v14 = vpop.f32.mrb[22].mxu0 }
 0xa2b   : > { %v2978_v15 = vpop.f32.mrb[23].mxu0  ;;  %v1809_v16 = vsel %vm1069_vm3, %v1808_v12, -inf }
 0xa2c   : > { %1810 = vmax.xlane.f32.xlu1 %v1809_v16 }
 0xa9b   : > { %v1916_v18 = vpop.f32.mrb[24].mxu0 }
 0xa9c   : > { %v1922_v20 = vmul.f32 %v1916_v18, %v3646_v45  ;;  %v2989_v22 = vpop.f32.mrb[25].mxu0 }
 0xa9d   : > { %v1919_v23 = vpop.f32.mrb[26].mxu0 }
 0xa9e   : > { %v2990_v24 = vpop.f32.mrb[27].mxu0  ;;  %v1923_v25 = vsel %vm1069_vm3, %v1922_v20, -inf }
 0xa9f   : > { %1924 = vmax.xlane.f32.xlu0 %v1923_v25 }
 0xaa3   : > { %v2027_v26 = vpop.f32.mrb[28].mxu0 }
 0xaa4   : > { %v2033_v27 = vmul.f32 %v2027_v26, %v3646_v45  ;;  %v3001_v28 = vpop.f32.mrb[29].mxu0 }
 0xaa5   : > { %v2030_v29 = vpop.f32.mrb[30].mxu0 }
 0xaa6   : > { %v3002_v30 = vpop.f32.mrb[31].mxu0  ;;  %v2034_v31 = vsel %vm1069_vm3, %v2033_v27, -inf }
 0xaa7   : > { %2035 = vmax.xlane.f32.xlu0 %v2034_v31 }
 0xaab   : > { %v2138_v32 = vpop.f32.mrb[32].mxu0 }
 0xaac   : > { %v2144_v33 = vmul.f32 %v2138_v32, %v3646_v45  ;;  %v3013_v34 = vpop.f32.mrb[33].mxu0 }
 0xaad   : > { %v2141_v35 = vpop.f32.mrb[34].mxu0 }
 0xaae   : > { %v3014_v36 = vpop.f32.mrb[35].mxu0  ;;  %v2145_v37 = vsel %vm1069_vm3, %v2144_v33, -inf }
 0xaaf   : > { %2146 = vmax.xlane.f32.xlu1 %v2145_v37 }
 0xab9   : > { %v1811_v42 = vpop.xlane.xlu1 %1810 }
 0xaba   : > { %v1812_v45 = vsub.f32 %v1808_v12, %v1811_v42 }
 0xabc   : > { %v1813_v43 = vmul.f32 1.442695, %v1812_v45 }
 0xabd   : > { %1747 = vrot.lane.b32.xlu0 %v1745_v39, %s3309_s16 }
 0xabe   : > { %3176 = vpow2.f32 %v1813_v43 }
 0xac0   : > { %1754 = vrot.lane.b32.xlu1 %v1752_v40, %s3309_s16 }
 0xac8   : > { %v3177_v44 = vpop.eup %3176 }
 0xac9   : > { %v1815_v46 = vsel %vm1069_vm3, %v3177_v44, 0.0 }
 0xae4   : > { %1816 = vadd.xlane.f32.xlu1 %v1815_v46 }
 0xb2c   : > { %v1925_v47 = vpop.xlane.xlu0 %1924 }
 0xb2d   : > { %v1926_v48 = vsub.f32 %v1922_v20, %v1925_v47 }
 0xb2f   : > { %v1927_v49 = vmul.f32 1.442695, %v1926_v48 }
 0xb31   : > { %3178 = vpow2.f32 %v1927_v49 }
 0xb34   : > { %v2036_v50 = vpop.xlane.xlu0 %2035 }
 0xb35   : > { %v2037_v51 = vsub.f32 %v2033_v27, %v2036_v50 }
 0xb37   : > { %v2038_v52 = vmul.f32 1.442695, %v2037_v51 }
 0xb38   : > { %v1748_v41 = vpop.permute.xlu0 %1747 }
 0xb39   : > { %3180 = vpow2.f32 %v2038_v52  ;;  %v1750_v58 = vadd.f32 %v1748_v41, %v3735_v55 }
 0xb3b   : > { %v3179_v54 = vpop.eup %3178 }
 0xb3c   : > { %v2147_v56 = vpop.xlane.xlu1 %2146  ;;  %v1929_v57 = vsel %vm1069_vm3, %v3179_v54, 0.0 }
 0xb3d   : > { %1930 = vadd.xlane.f32.xlu0 %v1929_v57  ;;  %v2148_v1 = vsub.f32 %v2144_v33, %v2147_v56 }
 0xb3f   : > { %v2149_v2 = vmul.f32 1.442695, %v2148_v1 }
 0xb40   : > { %v1755_v59 = vpop.permute.xlu1 %1754 }
 0xb41   : > { %v1757_v60 = vadd.f32 %v1755_v59, %v1750_v58  ;;  %3182 = vpow2.f32 %v2149_v2 }
 0xb43   : > { %v3181_v61 = vpop.eup %3180  ;;  %v1758_v62 = vmul.f32 0.33333334, %v1757_v60 }
 0xb44   : > { %v2040_v63 = vsel %vm1069_vm3, %v3181_v61, 0.0 }
 0xb45   : > { %v1759_v0 = vpack.c.bf16 %v1758_v62, %v1758_v62  ;;  %2041 = vadd.xlane.f32.xlu0 %v2040_v63 }
 0xb47   : > { %1935 = vrot.lane.b32.xlu1 %v1759_v0, %s3297_s27 }
 0xb4b   : > { %v3183_v3 = vpop.eup %3182 }
 0xb4c   : > { %v2151_v55 = vsel %vm1069_vm3, %v3183_v3, 0.0 }
 0xb5b   : > { %1822 = vrot.lane.b32.xlu0 %v1759_v0, %s3295_s30 }
 0xb5f   : > { %2157 = vrot.lane.b32.xlu0 %v1759_v0, %s3298_s20 }
 0xb6b   : > { %2152 = vadd.xlane.f32.xlu1 %v2151_v55  ;;  %v3153_v55 = vld [vmem:[%s3553_s9 + $0x8] sm:$0xff]  }
 0xb71   : > { %v1817_v4 = vpop.xlane.xlu1 %1816 }
 0xb72   : > { %3184 = vrcp.f32 %v1817_v4  ;;  %v3155_v4 = vld [vmem:[%s3563_s8 + $0x8] sm:$0xff]  }
 0xb7c   : > { %2046 = vrot.lane.b32.xlu1 %v1759_v0, %s3296_s5  ;;  %v3185_v6 = vpop.eup %3184  ;;  %s4024_s5 = sld [smem:[#allocation31_spill]] }
 0xb7d   : > { %v1819_v8 = vmul.f32 %v3185_v6, %v3177_v44 }
 0xb7f   : > { %v1820_v12 = vpack.c.bf16 %v1819_v8, %v1819_v8 }
 0xb82   : > { %s4025_s27 = scalar_lea.vmem %s4024_s5, %s3493_s0 }
 0xbb9   : > { %v1936_v11 = vpop.permute.xlu1 %1935 }
 0xbba   : > { %v1941_v14 = vsel %vm1135_vm6, %v1936_v11, 0  ;;  %v2813_v11 = vld [vmem:[%s4027_s14] ss:$0 sm:$0xff] }
 0xbca   : > { %v1931_v5 = vpop.xlane.xlu0 %1930 }
 0xbcb   : > { %3186 = vrcp.f32 %v1931_v5 }
 0xbd2   : > { %v2042_v7 = vpop.xlane.xlu0 %2041 }
 0xbd3   : > { %3188 = vrcp.f32 %v2042_v7 }
 0xbd5   : > { %v3187_v13 = vpop.eup %3186 }
 0xbd6   : > { %v1823_v9 = vpop.permute.xlu0 %1822  ;;  %v1933_v15 = vmul.f32 %v3187_v13, %v3179_v54 }
 0xbd7   : > { %v1828_v10 = vsel %vm1135_vm6, %v1823_v9, 0  ;;  %v2812_v9 = vld [vmem:[%s4025_s27] ss:$0 sm:$0xff] }
 0xbd8   : > { %2980 = vmatpush3.bf16.msra.mxu1 %v1828_v10  ;;  %v1934_v16 = vpack.c.bf16 %v1933_v15, %v1933_v15  ;;  %v3156_v15 = vld [vmem:[%s3563_s8 + $0x10] sm:$0xff]  }
 0xbd9   : > { %2991 = vmatprep.subr.bf16.mxu1 %v3292_v17 }
 0xbda   : > { %v2158_v25 = vpop.permute.xlu0 %2157 }
 0xbdb   : > { %2982 = vmatmul.mubr.msk.bf16.vlgmr.msra.gmra.mrb[28].mxu1 %vm1069_vm3, %v1820_v12  ;;  %v2163_v27 = vsel %vm1135_vm6, %v2158_v25, 0 }
 0xbdc   : > { %2992 = vmatpush3.bf16.msra.mxu1 %v1941_v14  ;;  %2993 = vmatprep.mubr.msk.bf16.mxu1 %vm3293_vm1, %v3292_v17 }
 0xbdd   : > { %3003 = vmatprep.subr.bf16.mxu1 %v3292_v17  ;;  %v3189_v18 = vpop.eup %3188 }
 0xbde   : > { %v2044_v22 = vmul.f32 %v3189_v18, %v3181_v61  ;;  %v2814_v18 = vld [vmem:[%s905_s10] ss:$0 sm:$0xff] }
 0xbe0   : > { %v2045_v26 = vpack.c.bf16 %v2044_v22, %v2044_v22 }
 0xbe3   : > { %2994 = vmatmul.mubr.msk.bf16.vlgmr.msra.gmra.mrb[32].mxu1 %vm1069_vm3, %v1934_v16  ;;  %v3157_v16 = vld [vmem:[%s3563_s8 + $0x18] sm:$0xff]  }
 0xbe4   : > { %3005 = vmatprep.mubr.msk.bf16.mxu1 %vm3293_vm1, %v3292_v17 }
 0xbf8   : > { %v2153_v20 = vpop.xlane.xlu1 %2152 }
 0xbf9   : > { %3190 = vrcp.f32 %v2153_v20 }
 0xbfc   : > { %v2047_v23 = vpop.permute.xlu1 %2046 }
 0xbfd   : > { %v2052_v24 = vsel %vm1135_vm6, %v2047_v23, 0 }
 0xbfe   : > { %3004 = vmatpush3.bf16.msra.mxu1 %v2052_v24 }
 0xbff   : > { %3015 = vmatprep.subr.bf16.mxu1 %v3292_v17 }
 0xc01   : > { %3006 = vmatmul.mubr.msk.bf16.vlgmr.msra.gmra.mrb[36].mxu1 %vm1069_vm3, %v2045_v26 }
 0xc02   : > { %3016 = vmatpush3.bf16.msra.mxu1 %v2163_v27  ;;  %3017 = vmatprep.mubr.msk.bf16.mxu1 %vm3293_vm1, %v3292_v17 }
 0xc03   : > { %v3191_v28 = vpop.eup %3190  ;;  %3029 = vmatprep.subr.bf16.mxu1 %v3292_v17 }
 0xc04   : > { %v2155_v29 = vmul.f32 %v3191_v28, %v3183_v3  ;;  %v3152_v3 = vld [vmem:[%s3553_s9] sm:$0xff]  }
 0xc06   : > { %v2156_v30 = vpack.c.bf16 %v2155_v29, %v2155_v29 }
 0xc09   : > { %3018 = vmatmul.mubr.msk.bf16.vlgmr.msra.gmra.mrb[40].mxu1 %vm1069_vm3, %v2156_v30 }
 0xc0a   : > { %3033 = vmatprep.mubr.msk.bf16.mxu1 %vm3293_vm1, %v3292_v17  ;;  %3030 = vmatpush3.bf16.msra.mxu1 %v3152_v3 }
 0xc0b   : > { %3031 = vmatprep.subr.bf16.mxu1 %v3292_v17 }
 0xc0e   : > { %3032 = vmatpush3.bf16.msra.mxu1 %v3153_v55 }
 0xcae   : > { %v1864_v31 = vpop.f32.mrb[28].mxu1 }
 0xcaf   : > { %v2983_v32 = vpop.f32.mrb[29].mxu1 }
 0xcb0   : > { %v1867_v33 = vpop.f32.mrb[30].mxu1 }
 0xcb1   : > { %v2984_v34 = vpop.f32.mrb[31].mxu1 }
 0xcb6   : > { %v1977_v35 = vpop.f32.mrb[32].mxu1 }
 0xcb7   : > { %2206 = vrot.lane.b32.xlu1 %v1977_v35, %s3306_s19  ;;  %v2995_v36 = vpop.f32.mrb[33].mxu1 }
 0xcb8   : > { %v1980_v37 = vpop.f32.mrb[34].mxu1 }
 0xcb9   : > { %v2996_v38 = vpop.f32.mrb[35].mxu1 }
 0xcd4   : > { %v2088_v39 = vpop.f32.mrb[36].mxu1 }
 0xcd5   : > { %2210 = vrot.lane.b32.xlu0 %v2088_v39, %s3307_s23  ;;  %v3007_v40 = vpop.f32.mrb[37].mxu1 }
 0xcd6   : > { %v2091_v42 = vpop.f32.mrb[38].mxu1 }
 0xcd7   : > { %v3008_v45 = vpop.f32.mrb[39].mxu1 }
 0xcd8   : > { %v2824_v45 = vld [vmem:[%s916_s26] ss:$0 sm:$0xff] }
 0xcdc   : > { %v2199_v43 = vpop.f32.mrb[40].mxu1 }
 0xcdd   : > { %2214 = vrot.lane.b32.xlu1 %v2199_v43, %s3308_s28  ;;  %v3019_v44 = vpop.f32.mrb[41].mxu1 }
 0xcde   : > { %v2202_v46 = vpop.f32.mrb[42].mxu1  ;;  %v2825_v44 = vld [vmem:[%s919_s12] ss:$0 sm:$0xff] }
 0xcdf   : > { %v3020_v47 = vpop.f32.mrb[43].mxu1 }
 0xd29   : > { %v2207_v48 = vpop.permute.xlu1 %2206 }
 0xd2a   : > { %v2217_v50 = vsel %vm1069_vm3, %v1864_v31, %v2207_v48 }
 0xd47   : > { %v2211_v49 = vpop.permute.xlu0 %2210 }
 0xd48   : > { %v2218_v51 = vsel %vm1525_vm7, %v2217_v50, %v2211_v49 }
 0xd4f   : > { %v2215_v52 = vpop.permute.xlu1 %2214 }
 0xd50   : > { %v2219_v54 = vsel %vm1527_vm8, %v2218_v51, %v2215_v52 }
 0xd51   : > { %v2220_v41 = vpack.c.bf16 %v2219_v54, %v2219_v54 }
 0xd53   : > { %3026 = vmatmul.mubr.msk.bf16.vlgmr.msra.gmra.mrb[36].mxu0 %vm993_vm2, %v2220_v41 }
 0xd54   : > { %3045 = vmatprep.mubr.msk.bf16.mxu0 %vm3293_vm1, %v3292_v17 }
 0xe26   : > { %v2270_v56 = vpop.f32.mrb[36].mxu0 }
 0xe27   : > { %v2276_v57 = vadd.f32 %v2270_v56, %v3728_v53  ;;  %v3027_v58 = vpop.f32.mrb[37].mxu0  ;;  %v3154_v53 = vld [vmem:[%s3563_s8] sm:$0xff]  }
 0xe28   : > { %v2273_v59 = vpop.f32.mrb[38].mxu0  ;;  %3038 = vmatpush3.bf16.msra.mxu0 %v3154_v53 }
 0xe29   : > { %v3028_v60 = vpop.f32.mrb[39].mxu0  ;;  %v2277_v61 = vsel %vm993_vm2, %v2276_v57, 0.0  ;;  %3039 = vmatprep.subr.bf16.mxu0 %v3292_v17 }
 0xe2a   : > { %2278 = vadd.xlane.f32.xlu0 %v2277_v61 }
 0xe2c   : > { %3040 = vmatpush3.bf16.msra.mxu0 %v3155_v4 }
 0xe2d   : > { %3041 = vmatprep.subr.bf16.mxu0 %v3292_v17 }
 0xe30   : > { %3042 = vmatpush3.bf16.msra.mxu0 %v3156_v15 }
 0xe31   : > { %3043 = vmatprep.subr.bf16.mxu0 %v3292_v17  ;;  %v2818_v17 = vld [vmem:[%s913_s18] ss:$0 sm:$0xff] }
 0xe34   : > { %3044 = vmatpush3.bf16.msra.mxu0 %v3157_v16 }
 0xeb7   : > { %v2279_v62 = vpop.xlane.xlu0 %2278 }
 0xeb8   : > { %v2280_v63 = vmul.f32 0.03125, %v2279_v62 }
 0xeba   : > { %v2281_v0 = vsub.f32 %v2276_v57, %v2280_v63 }
 0xebc   : > { %v2282_v1 = vmul.f32 %v2281_v0, %v2281_v0 }
 0xebe   : > { %v2283_v2 = vsel %vm993_vm2, %v2282_v1, 0.0 }
 0xebf   : > { %2284 = vadd.xlane.f32.xlu1 %v2283_v2 }
 0xf4c   : > { %v2285_v5 = vpop.xlane.xlu1 %2284 }
 0xf4d   : > { %v2286_v6 = vmul.f32 0.03125, %v2285_v5 }
 0xf4f   : > { %v2287_v7 = vadd.f32 1e-06, %v2286_v6 }
 0xf51   : > { %3192 = vrsqrt.f32 %v2287_v7 }
 0xf5b   : > { %v3193_v8 = vpop.eup %3192 }
 0xf5c   : > { %v2289_v10 = vmul.f32 %v3193_v8, %v2281_v0 }
 0xf5e   : > { %v2296_v12 = vmul.f32 %v2812_v9, %v2289_v10 }
 0xf60   : > { %v2303_v13 = vadd.f32 %v2813_v11, %v2296_v12 }
 0xf62   : > { %v2304_v14 = vpack.c.bf16 %v2303_v13, %v2303_v13 }
 0xf64   : > { %3034 = vmatmul.mubr.msk.bf16.vlgmr.msra.gmra.mrb[44].mxu1 %vm993_vm2, %v2304_v14 }
0x1037   : > { %v2365_v20 = vpop.f32.mrb[44].mxu1 }
0x1038   : > { %v2366_v22 = vadd.f32 %v2814_v18, %v2365_v20  ;;  %v3035_v23 = vpop.f32.mrb[45].mxu1 }
0x1039   : > { %v2368_v24 = vpop.f32.mrb[46].mxu1 }
0x103a   : > { %v2371_v25 = vmax.f32 %v2366_v22, 0.0  ;;  %v3036_v26 = vpop.f32.mrb[47].mxu1 }
0x103c   : > { %v2372_v27 = vpack.c.bf16 %v2371_v25, %v2371_v25 }
0x103e   : > { %3046 = vmatmul.mubr.msk.bf16.vlgmr.msra.gmra.mrb[40].mxu0 %vm2412_vm9, %v2372_v27 }
0x1111   : > { %v2450_v28 = vpop.f32.mrb[40].mxu0 }
0x1112   : > { %v2451_v29 = vadd.f32 %v2818_v17, %v2450_v28  ;;  %v3047_v30 = vpop.f32.mrb[41].mxu0 }
0x1113   : > { %v2453_v31 = vpop.f32.mrb[42].mxu0 }
0x1114   : > { %v3048_v32 = vpop.f32.mrb[43].mxu0  ;;  %v2456_v33 = vadd.f32 %v2451_v29, %v2303_v13 }
0x1116   : > { %v2459_v34 = vsel %vm993_vm2, %v2456_v33, 0.0 }
0x1117   : > { %2460 = vadd.xlane.f32.xlu0 %v2459_v34 }
0x11a4   : > { %v2461_v35 = vpop.xlane.xlu0 %2460 }
0x11a5   : > { %v2462_v36 = vmul.f32 0.03125, %v2461_v35 }
0x11a7   : > { %v2463_v37 = vsub.f32 %v2456_v33, %v2462_v36 }
0x11a9   : > { %v2464_v38 = vmul.f32 %v2463_v37, %v2463_v37 }
0x11ab   : > { %v2465_v19 = vsel %vm993_vm2, %v2464_v38, 0.0 }
0x11ac   : > { %2466 = vadd.xlane.f32.xlu0 %v2465_v19 }
0x1239   : > { %v2467_v21 = vpop.xlane.xlu0 %2466 }
0x123a   : > { %v2468_v39 = vmul.f32 0.03125, %v2467_v21 }
0x123c   : > { %v2469_v40 = vadd.f32 1e-06, %v2468_v39 }
0x123e   : > { %3194 = vrsqrt.f32 %v2469_v40 }
0x1248   : > { %v3195_v42 = vpop.eup %3194 }
0x1249   : > { %v2471_v43 = vmul.f32 %v3195_v42, %v2463_v37  ;;  %2490 = sbr.rel (%p2826_p1) target bundleno = 4688 (0x1250), region = 108 }
0x124b   : > { %v2478_v46 = vmul.f32 %v2824_v45, %v2471_v43 }
0x124d   : > { %v2485_v47 = vadd.f32 %v2825_v44, %v2478_v46 }
0x124f   : > { %2486 = vst.msk [vmem:[#allocation2] sm:$0xff] %vm993_vm2, %v2485_v47  ;;  %2491 = vst.msk [vmem:[%s849_s4] sm:$0xff] (!%p2826_p1), %vm993_vm2, %v2485_v47 }
0x1250 PF: > { %s4032_s11 = sld [smem:[#allocation10_spill]]  ;;  %s4033_s26 = sld [smem:[#allocation7_spill]] }
0x1251   : > { %s4035_s12 = sld [smem:[#allocation38_spill]]  ;;  %s2506_s30 = sshll.u32 %s849_s4, 4  ;;  %s2507_s30 = int_to_ptr.vmem [resolvable:$true] %s2506_s30 }
0x1252   : > { %s3196_s20 = scalar_lea.vmem %s2507_s30, 128  ;;  %s3310_s1 = smov [#allocation3]  }
0x1253   : > { %p3197_p2 = scmp.ne.s32.totalorder %s2507_s30, %s3196_s20  ;;  %s3200_s24 = sshll.u32 %s3310_s1, 4  ;;  %s3201_s24 = int_to_ptr.vmem [resolvable:$false] %s3200_s24 }
0x1254   : > { %s3202_s14 = scalar_lea.vmem %s3201_s24, 256  ;;  %p3203_p6 = scmp.lt.s32.totalorder %s2507_s30, %s3201_s24 }
0x1255   : > { %p3198_p4 = pnand %p3197_p2, %p3465_p3  ;;  %p3204_p7 = scmp.lt.s32.totalorder %s3202_s14, %s3196_s20 }
0x1256   : > { %s2828_s16 = sshll.u32 %s4032_s11, 7  ;;  %s4036_s5 = sand.u32 1, %s4033_s26  }
0x1257   : > { %s3876_s9 = scalar_lea.hbm %s4035_s12, %s2828_s16  ;;  %s2493_s27 = scalar_lea.sflag [#allocation4], %s4036_s5 }
0x1258   : > { %p3199_p5 = pneg %p3198_p4  ;;  %p3205_p8 = por %p3204_p7, %p3203_p6 }
0x125a   : > { %p3206_p10 = pnand %p3205_p8, %p3199_p5 }
0x125c   : > { %3209 = shalt.err (!%p3206_p10)
}
0x125d   : > { %s3210_s25 = scalar_lea.hbm %s3876_s9, 128  ;;  %s3214_s19 = scalar_lea.hbm %s4035_s12, 256 }
0x125e   : > { %p3211_p11 = scmp.ne.s32.totalorder %s3876_s9, %s3210_s25  ;;  %p3215_p0 = scmp.lt.u32.totalorder %s3876_s9, %s4035_s12 }
0x125f   : > { %p3216_p1 = scmp.lt.u32.totalorder %s3214_s19, %s3210_s25  ;;  %p3218_p4 = scmp.lt.u32.totalorder %s3210_s25, %s3876_s9 }
0x1260   : > { %p3212_p12 = pnand %p3211_p11, %p3465_p3 }
0x1261   : > { %p3217_p2 = por %p3216_p1, %p3215_p0 }
0x1262   : > { %p3213_p13 = pneg %p3212_p12 }
0x1263   : > { %p3219_p5 = por %p3218_p4, %p3217_p2 }
0x1265   : > { %p3220_p6 = pnand %p3219_p5, %p3213_p13 }
0x1267   : > { %3223 = shalt.err (!%p3220_p6)
}
0x1268   : > { %3049 = dma.vmem_to_hbm [thread:$0]  (%p3465_p3), %s2507_s30, 128, %s3876_s9, %s2493_s27  }
0x1269 PF: > { %s4037_s17 = sld [smem:[#allocation13_spill]]  ;;  %s4038_s8 = sld [smem:[#allocation6_spill]] }
0x126f   : > { %p3055_p7 = scmp.ge.s32.totalorder %s4037_s17, 2  ;;  %s2518_s18 = sand.u32 1, %s4038_s8  }
0x1270   : > { %s2519_s21 = scalar_lea.sflag [#allocation4], %s2518_s18 }
0x1271   : > { %p3052_p8 = pnand %p3055_p7, %p3475_p9 }
0x1273   : > { %3257 = dma.done.wait (!%p3052_p8), %s2519_s21, 128  }
0x1274   : > { %3259 = vsyncadd (!%p3052_p8), %s2519_s21, 4294967168  ;;  %s33_s26 = sadd.s32 1, %s4037_s17   ;;  %s4040_s1 = sld [smem:[#allocation7_spill]] }
0x1275   : > { %p30_p10 = scmp.ge.s32.totalorder %s33_s26, 6   ;;  %s4041_s22 = sld [smem:[#allocation8_spill]] }
0x1276   : > { %s4042_s23 = sld [smem:[#allocation18_spill]]  ;;  %s4043_s24 = sld [smem:[#allocation11_spill]] }
0x1277   : > { %s4044_s2 = sld [smem:[#allocation12_spill]]  ;;  %s4045_s25 = sld [smem:[#allocation14_spill]] }
0x1278   : > { %s4046_s3 = sld [smem:[#allocation16_spill]]  ;;  %32 = sbr.rel (!%p30_p10) target bundleno = 25 (0x19), region = 194 }
0x127f   :  { %2524 = vsyncpa [#allocation4], 1 }
0x1280   :  { %2526 = vsyncpa [#allocation4 + $0x1], 1 }

</bundles_post_ra>
